<compile_context>
chip_gen: v7x
topology: tpu7x:2x2x1
jax: 0.10.0
libtpu: 0.0.40
codegen_flags: <defaults>
</compile_context>

<pallas_src>
import math

import numpy as np
import jax
import jax.numpy as jnp
from jax import lax
from jax.experimental import pallas as pl
from jax.experimental.pallas import tpu as pltpu


# The 15 equivariant ops (input_op, output_op), mirroring MATRIX_OPS.
MATRIX_OPS = [
    ("gm_id", "i_id"),      # 0
    ("gt_tr", "t_tr"),      # 1
    ("g_diag", "b_row"),    # 2
    ("g_diag", "b_col"),    # 3
    ("g_diag", "e_diag"),   # 4
    ("p_col", "b_row"),     # 5
    ("p_col", "b_col"),     # 6
    ("p_col", "e_diag"),    # 7
    ("p_row", "b_row"),     # 8
    ("p_row", "b_col"),     # 9
    ("p_row", "e_diag"),    # 10
    ("p_all", "b_all"),     # 11
    ("p_all", "e_diag"),    # 12
    ("p_diag", "b_all"),    # 13
    ("p_diag", "e_diag"),   # 14
]


def _round_up(x, m):
    return ((x + m - 1) // m) * m


def _pick_tile(n, candidates):
    for t in candidates:
        if t <= n and n % t == 0:
            return t
    return n


# --------------------------------------------------------------------------
# Kernel: one (row_tile x col_tile) output block per grid step.
# --------------------------------------------------------------------------
def _equivariant_tile_kernel(x_ref, xt_ref, min_ref, mint_ref, mout_ref,
                             w01_ref, vrow_ref, vcol_ref, wrd_ref, wcol_ref,
                             y_ref):
    TR, TC, din_p = x_ref.shape
    dout_p = y_ref.shape[2]

    m_in = min_ref[...][:, :, None]          # (TR, TC, 1)
    m_in_t = mint_ref[...][:, :, None]

    # ---- ops 0 & 1 fused along K: [X*Min , X^T*Min^T] @ [w0 ; w1] ---------
    # (each sparsity mask is applied exactly once; out_mask is applied at the
    #  very end, valid because masks are {0,1}.)
    lhs = jnp.concatenate([x_ref[...] * m_in, xt_ref[...] * m_in_t], axis=-1)
    acc = jnp.dot(lhs.reshape(TR * TC, 2 * din_p), w01_ref[...],
                  preferred_element_type=jnp.float32).reshape(TR, TC, dout_p)

    # ---- ops 2..14 fused: two small matmuls on the pooled-feature tiles ----
    # vrow/vcol rows = [diag_vals | row_pool | col_pool | all_pool | diag_pool]
    rd = jnp.dot(vrow_ref[...], wrd_ref[...],
                 preferred_element_type=jnp.float32)          # (TR, 2*dout_p)
    row_vec = rd[:, :dout_p]        # b_row (+ folded b_all) per output row
    diag_vec = rd[:, dout_p:]       # e_diag per output row
    col_vec = jnp.dot(vcol_ref[...], wcol_ref[...],
                      preferred_element_type=jnp.float32)     # (TC, dout_p)

    # ---- one broadcast-add per expansion pattern ---------------------------
    acc = acc + row_vec[:, None, :] + col_vec[None, :, :]

    r0 = pl.program_id(0) * TR
    c0 = pl.program_id(1) * TC
    gi = lax.broadcasted_iota(jnp.int32, (TR, TC), 0) + r0
    gj = lax.broadcasted_iota(jnp.int32, (TR, TC), 1) + c0
    diag_mask = (gi == gj).astype(acc.dtype)
    acc = acc + diag_vec[:, None, :] * diag_mask[:, :, None]

    # Y lives on X_out's sparsity pattern.
    y_ref[...] = acc * mout_ref[...][:, :, None]


# --------------------------------------------------------------------------
# Wrapper: cheap prologue (pools + fused weights) + tiled pallas_call.
# --------------------------------------------------------------------------
def sparse_matrix_equivariant_shared_block(x, in_mask, out_mask, weights,
                                           *, row_tile=None, col_tile=None):
    """Forward pass of SparseMatrixEquivariantLayerSharedBlock (all 15 ops)."""
    f32 = jnp.float32
    x = x.astype(f32)
    in_mask = in_mask.astype(f32)
    out_mask = out_mask.astype(f32)
    weights = weights.astype(f32)

    N = x.shape[0]
    din, dout = x.shape[2], weights.shape[-1]
    din_p = _round_up(din, 128)      # lane-dense + full MXU K
    dout_p = _round_up(dout, 128)    # lane-dense stores + full MXU N

    # ---- channel padding (zeros contribute nothing) ------------------------
    x_p = jnp.pad(x, ((0, 0), (0, 0), (0, din_p - din)))
    w_p = jnp.pad(weights, ((0, 0), (0, din_p - din), (0, dout_p - dout)))
    xt_p = jnp.transpose(x_p, (1, 0, 2))
    in_mask_t = in_mask.T

    # ---- cheap prologue: the five pooled input quantities (pool_op='mean') -
    def mean_pool(s, c):
        return jnp.where(c > 0, s / jnp.maximum(c, 1.0), 0.0)

    row_sum = jnp.sum(x_p, axis=1)                                 # reused
    row_pool = mean_pool(row_sum, jnp.sum(in_mask, axis=1, keepdims=True))   # 'p_col'
    col_pool = mean_pool(jnp.sum(x_p, axis=0),
                         jnp.sum(in_mask, axis=0)[:, None])                   # 'p_row'
    all_pool = mean_pool(jnp.sum(row_sum, axis=0, keepdims=True),
                         jnp.sum(in_mask)[None, None])                        # 'p_all'
    idx = jnp.arange(N)
    diag_vals = x_p[idx, idx, :]                                              # 'g_diag'
    diag_pool = mean_pool(jnp.sum(diag_vals, axis=0, keepdims=True),
                          jnp.sum(in_mask[idx, idx])[None, None])             # 'p_diag'

    ones_n = jnp.ones((N, 1), f32)
    lhs_vec = jnp.concatenate(
        [diag_vals, row_pool, col_pool, ones_n * all_pool, ones_n * diag_pool],
        axis=1)                                                    # (N, 5*din_p)

    # ---- fused weights (built once, in the wrapper) ------------------------
    w01 = jnp.concatenate([w_p[0], w_p[1]], axis=0)                # (2*din_p, dout_p)
    zero = jnp.zeros((din_p, dout_p), f32)
    w_row = jnp.concatenate([w_p[2], w_p[5], w_p[8], w_p[11], w_p[13]], axis=0)
    w_dia = jnp.concatenate([w_p[4], w_p[7], w_p[10], w_p[12], w_p[14]], axis=0)
    w_rowdiag = jnp.concatenate([w_row, w_dia], axis=1)            # (5*din_p, 2*dout_p)
    w_col = jnp.concatenate([w_p[3], w_p[6], w_p[9], zero, zero], axis=0)  # (5*din_p, dout_p)

    # ---- tile choice --------------------------------------------------------
    TR = row_tile if row_tile is not None else _pick_tile(N, (256, 128, 64, 32, 16, 8))
    TC = col_tile if col_tile is not None else _pick_tile(N, (256, 128))
    assert N % TR == 0 and N % TC == 0, "tiles must divide N"
    grid = (N // TR, N // TC)

    grid_spec = pltpu.PrefetchScalarGridSpec(
        num_scalar_prefetch=0,
        grid=grid,
        in_specs=[
            pl.BlockSpec((TR, TC, din_p), lambda r, c: (r, c, 0)),      # X
            pl.BlockSpec((TR, TC, din_p), lambda r, c: (r, c, 0)),      # X^T
            pl.BlockSpec((TR, TC), lambda r, c: (r, c)),                # in_mask
            pl.BlockSpec((TR, TC), lambda r, c: (r, c)),                # in_mask^T
            pl.BlockSpec((TR, TC), lambda r, c: (r, c)),                # out_mask
            pl.BlockSpec((2 * din_p, dout_p), lambda r, c: (0, 0)),     # [w0;w1]
            pl.BlockSpec((TR, 5 * din_p), lambda r, c: (r, 0)),         # pooled feats (row tile)
            pl.BlockSpec((TC, 5 * din_p), lambda r, c: (c, 0)),         # pooled feats (col tile)
            pl.BlockSpec((5 * din_p, 2 * dout_p), lambda r, c: (0, 0)), # fused b_row/e_diag w
            pl.BlockSpec((5 * din_p, dout_p), lambda r, c: (0, 0)),     # fused b_col w
        ],
        out_specs=pl.BlockSpec((TR, TC, dout_p), lambda r, c: (r, c, 0)),
    )

    y_p = pl.pallas_call(
        _equivariant_tile_kernel,
        out_shape=jax.ShapeDtypeStruct((N, N, dout_p), f32),
        grid_spec=grid_spec,
        compiler_params=pltpu.CompilerParams(
            dimension_semantics=("parallel", "parallel"),
            vmem_limit_bytes=64 * 1024 * 1024),
    )(x_p, xt_p, in_mask, in_mask_t, out_mask,
      w01, lhs_vec, lhs_vec, w_rowdiag, w_col)

    return y_p[:, :, :dout]


# ---------------- pure-JAX reference (mirrors the PyTorch forward dispatch) --
def reference_forward(x, in_mask, out_mask, weights, pool_op="mean"):
    N, _, Din = x.shape
    eye = jnp.eye(N, dtype=x.dtype)
    xt = jnp.transpose(x, (1, 0, 2))
    in_mask_t = in_mask.T

    def pool(s, c):
        if pool_op == "mean":
            return jnp.where(c > 0, s / jnp.maximum(c, 1.0), 0.0)
        return s

    def input_op(op_str):
        op, idx = op_str.split("_")
        if op == "g":
            return x[jnp.arange(N), jnp.arange(N), :]
        if op == "p":
            if idx == "col":
                return pool(x.sum(1), in_mask.sum(1, keepdims=True))
            if idx == "row":
                return pool(xt.sum(1), in_mask_t.sum(1, keepdims=True))
            if idx == "all":
                return pool(x.sum((0, 1))[None, :], in_mask.sum()[None, None])
            if idx == "diag":
                d = x[jnp.arange(N), jnp.arange(N), :]
                return pool(d.sum(0, keepdims=True), jnp.diag(in_mask).sum()[None, None])
        raise ValueError(op_str)

    def output_op(op_str, v):
        op, idx = op_str.split("_")
        if op == "b":
            if idx == "row":
                return jnp.broadcast_to(v[:, None, :], (N, N, v.shape[-1]))
            if idx in ("col", "all"):
                return jnp.broadcast_to(v[None, :, :], (N, N, v.shape[-1]))
        if op == "e":
            return v[:, None, :] * eye[:, :, None]
        raise ValueError(op_str)

    Dout = weights.shape[-1]
    Y = jnp.zeros((N, N, Dout), dtype=x.dtype)
    for i, (op_inp, op_out) in enumerate(MATRIX_OPS):
        w = weights[i]
        if op_out[0] == "i":
            Y = Y + (x * (in_mask * out_mask)[:, :, None]) @ w
        elif op_out[0] == "t":
            Y = Y + (xt * (in_mask_t * out_mask)[:, :, None]) @ w
        else:
            Y = Y + output_op(op_out, input_op(op_inp) @ w)
    return Y * out_mask[:, :, None]


if __name__ == "__main__":
    key = jax.random.PRNGKey(0)
    N, in_dim, out_dim = 16, 32, 32
    k1, k2, k3, k4 = jax.random.split(key, 4)

    in_mask = (jax.random.uniform(k1, (N, N)) < 0.5).astype(jnp.float32)
    out_mask = (jax.random.uniform(k2, (N, N)) < 0.5).astype(jnp.float32)
    x = jax.random.normal(k3, (N, N, in_dim), dtype=jnp.float32) * in_mask[:, :, None]

    # deterministic parameter init, matching nn.Parameter(...).uniform_(-stdv, stdv)
    stdv = 1.0 / math.sqrt(in_dim)
    weights = jax.random.uniform(
        k4, (len(MATRIX_OPS), in_dim, out_dim),
        minval=-stdv, maxval=stdv, dtype=jnp.float32)

    fwd = jax.jit(sparse_matrix_equivariant_shared_block,
                  static_argnames=("row_tile", "col_tile"))
    # row_tile=8 -> a (2, 1) grid, so the tiling / index_map path is exercised.
    y = fwd(x, in_mask, out_mask, weights, row_tile=8)
    y = jax.block_until_ready(y)

    y_ref = reference_forward(x, in_mask, out_mask, weights)
    np.testing.assert_allclose(np.asarray(y), np.asarray(y_ref), rtol=1e-3, atol=1e-3)
    print("KERNEL_OK")
</pallas_src>

<mosaic_0001>
module attributes {stable_mosaic.version = 11 : i64} {
  func.func @_equivariant_tile_kernel(%arg0: i32, %arg1: i32, %arg2: memref<8x16x128xf32, #tpu.memory_space<vmem>>, %arg3: memref<8x16x128xf32, #tpu.memory_space<vmem>>, %arg4: memref<8x16xf32, #tpu.memory_space<vmem>>, %arg5: memref<8x16xf32, #tpu.memory_space<vmem>>, %arg6: memref<8x16xf32, #tpu.memory_space<vmem>>, %arg7: memref<256x128xf32, #tpu.memory_space<vmem>>, %arg8: memref<8x640xf32, #tpu.memory_space<vmem>>, %arg9: memref<16x640xf32, #tpu.memory_space<vmem>>, %arg10: memref<640x256xf32, #tpu.memory_space<vmem>>, %arg11: memref<640x128xf32, #tpu.memory_space<vmem>>, %arg12: memref<8x16x128xf32, #tpu.memory_space<vmem>>) attributes {dimension_semantics = [#tpu.dimension_semantics<parallel>, #tpu.dimension_semantics<parallel>], iteration_bounds = array<i64: 2, 1>, scalar_prefetch = 0 : i64, scratch_operands = 0 : i64, tpu.core_type = #tpu.core_type<tc>, window_params = [{transform_indices = @transform_0, window_bounds = array<i64: 8, 16, 128>}, {transform_indices = @transform_1, window_bounds = array<i64: 8, 16, 128>}, {transform_indices = @transform_2, window_bounds = array<i64: 8, 16>}, {transform_indices = @transform_3, window_bounds = array<i64: 8, 16>}, {transform_indices = @transform_4, window_bounds = array<i64: 8, 16>}, {pipeline_mode = #tpu.pipeline_mode<synchronous>, transform_indices = @transform_5, window_bounds = array<i64: 256, 128>}, {transform_indices = @transform_6, window_bounds = array<i64: 8, 640>}, {transform_indices = @transform_7, window_bounds = array<i64: 16, 640>}, {pipeline_mode = #tpu.pipeline_mode<synchronous>, transform_indices = @transform_8, window_bounds = array<i64: 640, 256>}, {pipeline_mode = #tpu.pipeline_mode<synchronous>, transform_indices = @transform_9, window_bounds = array<i64: 640, 128>}, {transform_indices = @transform_10, window_bounds = array<i64: 8, 16, 128>}]} {
    %c0 = arith.constant 0 : index
    %c0_0 = arith.constant 0 : index
    %0 = vector.load %arg4[%c0, %c0_0] : memref<8x16xf32, #tpu.memory_space<vmem>>, vector<8x16xf32>
    %1 = vector.shape_cast %0 : vector<8x16xf32> to vector<8x16x1xf32>
    %c0_1 = arith.constant 0 : index
    %c0_2 = arith.constant 0 : index
    %2 = vector.load %arg5[%c0_1, %c0_2] : memref<8x16xf32, #tpu.memory_space<vmem>>, vector<8x16xf32>
    %3 = vector.shape_cast %2 : vector<8x16xf32> to vector<8x16x1xf32>
    %c0_3 = arith.constant 0 : index
    %c0_4 = arith.constant 0 : index
    %c0_5 = arith.constant 0 : index
    %4 = vector.load %arg2[%c0_3, %c0_4, %c0_5] : memref<8x16x128xf32, #tpu.memory_space<vmem>>, vector<8x16x128xf32>
    %5 = vector.broadcast %1 : vector<8x16x1xf32> to vector<8x16x128xf32>
    %6 = arith.mulf %4, %5 : vector<8x16x128xf32>
    %c0_6 = arith.constant 0 : index
    %c0_7 = arith.constant 0 : index
    %c0_8 = arith.constant 0 : index
    %7 = vector.load %arg3[%c0_6, %c0_7, %c0_8] : memref<8x16x128xf32, #tpu.memory_space<vmem>>, vector<8x16x128xf32>
    %8 = vector.broadcast %3 : vector<8x16x1xf32> to vector<8x16x128xf32>
    %9 = arith.mulf %7, %8 : vector<8x16x128xf32>
    %10 = tpu.concatenate %6, %9 in 2 : vector<8x16x128xf32>, vector<8x16x128xf32> -> vector<8x16x256xf32>
    %11 = vector.shape_cast %10 : vector<8x16x256xf32> to vector<128x256xf32>
    %c0_9 = arith.constant 0 : index
    %c0_10 = arith.constant 0 : index
    %12 = vector.load %arg7[%c0_9, %c0_10] : memref<256x128xf32, #tpu.memory_space<vmem>>, vector<256x128xf32>
    %cst = arith.constant dense<0.000000e+00> : vector<128x128xf32>
    %13 = tpu.matmul %11, %12, %cst {dimension_numbers = #tpu.dot_dimension_numbers<[1], [0], [0], [1], [0, 0, 1, 1], [], []>} : vector<128x256xf32>, vector<256x128xf32>, vector<128x128xf32> -> vector<128x128xf32>
    %14 = vector.shape_cast %13 : vector<128x128xf32> to vector<8x16x128xf32>
    %c0_11 = arith.constant 0 : index
    %c0_12 = arith.constant 0 : index
    %15 = vector.load %arg8[%c0_11, %c0_12] : memref<8x640xf32, #tpu.memory_space<vmem>>, vector<8x640xf32>
    %c0_13 = arith.constant 0 : index
    %c0_14 = arith.constant 0 : index
    %16 = vector.load %arg10[%c0_13, %c0_14] : memref<640x256xf32, #tpu.memory_space<vmem>>, vector<640x256xf32>
    %cst_15 = arith.constant dense<0.000000e+00> : vector<8x256xf32>
    %17 = tpu.matmul %15, %16, %cst_15 {dimension_numbers = #tpu.dot_dimension_numbers<[1], [0], [0], [1], [0, 0, 1, 1], [], []>} : vector<8x640xf32>, vector<640x256xf32>, vector<8x256xf32> -> vector<8x256xf32>
    %18 = vector.extract_strided_slice %17 {offsets = [0, 0], sizes = [8, 128], strides = [1, 1]} : vector<8x256xf32> to vector<8x128xf32>
    %19 = vector.extract_strided_slice %17 {offsets = [0, 128], sizes = [8, 128], strides = [1, 1]} : vector<8x256xf32> to vector<8x128xf32>
    %c0_16 = arith.constant 0 : index
    %c0_17 = arith.constant 0 : index
    %20 = vector.load %arg9[%c0_16, %c0_17] : memref<16x640xf32, #tpu.memory_space<vmem>>, vector<16x640xf32>
    %c0_18 = arith.constant 0 : index
    %c0_19 = arith.constant 0 : index
    %21 = vector.load %arg11[%c0_18, %c0_19] : memref<640x128xf32, #tpu.memory_space<vmem>>, vector<640x128xf32>
    %cst_20 = arith.constant dense<0.000000e+00> : vector<16x128xf32>
    %22 = tpu.matmul %20, %21, %cst_20 {dimension_numbers = #tpu.dot_dimension_numbers<[1], [0], [0], [1], [0, 0, 1, 1], [], []>} : vector<16x640xf32>, vector<640x128xf32>, vector<16x128xf32> -> vector<16x128xf32>
    %23 = vector.shape_cast %18 : vector<8x128xf32> to vector<8x1x128xf32>
    %24 = vector.broadcast %23 : vector<8x1x128xf32> to vector<8x16x128xf32>
    %25 = arith.addf %14, %24 : vector<8x16x128xf32>
    %26 = vector.shape_cast %22 : vector<16x128xf32> to vector<1x16x128xf32>
    %27 = vector.broadcast %26 : vector<1x16x128xf32> to vector<8x16x128xf32>
    %28 = arith.addf %25, %27 : vector<8x16x128xf32>
    %c8_i32 = arith.constant 8 : i32
    %29 = arith.muli %arg0, %c8_i32 : i32
    %c16_i32 = arith.constant 16 : i32
    %30 = arith.muli %arg1, %c16_i32 : i32
    %31 = tpu.iota {dimensions = array<i32: 0>} : vector<8x16xi32>
    %32 = vector.broadcast %29 : i32 to vector<8x16xi32>
    %33 = arith.addi %31, %32 : vector<8x16xi32>
    %34 = tpu.iota {dimensions = array<i32: 1>} : vector<8x16xi32>
    %35 = vector.broadcast %30 : i32 to vector<8x16xi32>
    %36 = arith.addi %34, %35 : vector<8x16xi32>
    %37 = arith.cmpi eq, %33, %36 : vector<8x16xi32>
    %38 = arith.extui %37 : vector<8x16xi1> to vector<8x16xi32>
    %39 = arith.sitofp %38 : vector<8x16xi32> to vector<8x16xf32>
    %40 = vector.shape_cast %19 : vector<8x128xf32> to vector<8x1x128xf32>
    %41 = vector.shape_cast %39 : vector<8x16xf32> to vector<8x16x1xf32>
    %42 = vector.broadcast %40 : vector<8x1x128xf32> to vector<8x16x128xf32>
    %43 = vector.broadcast %41 : vector<8x16x1xf32> to vector<8x16x128xf32>
    %44 = arith.mulf %42, %43 : vector<8x16x128xf32>
    %45 = arith.addf %28, %44 : vector<8x16x128xf32>
    %c0_21 = arith.constant 0 : index
    %c0_22 = arith.constant 0 : index
    %46 = vector.load %arg6[%c0_21, %c0_22] : memref<8x16xf32, #tpu.memory_space<vmem>>, vector<8x16xf32>
    %47 = vector.shape_cast %46 : vector<8x16xf32> to vector<8x16x1xf32>
    %48 = vector.broadcast %47 : vector<8x16x1xf32> to vector<8x16x128xf32>
    %49 = arith.mulf %45, %48 : vector<8x16x128xf32>
    %c0_23 = arith.constant 0 : index
    %c0_24 = arith.constant 0 : index
    %c0_25 = arith.constant 0 : index
    %50 = vector.load %arg12[%c0_23, %c0_24, %c0_25] : memref<8x16x128xf32, #tpu.memory_space<vmem>>, vector<8x16x128xf32>
    tpu.vector_store %arg12[%c0_23, %c0_24, %c0_25], %49 {strides = array<i32>} : memref<8x16x128xf32, #tpu.memory_space<vmem>>, vector<8x16x128xf32>,
    return
  }
  func.func @transform_0(%arg0: i32, %arg1: i32) -> (i32, i32, i32) {
    %c0_i32 = arith.constant 0 : i32
    %c0_i32_0 = arith.constant 0 : i32
    return %arg0, %arg1, %c0_i32 : i32, i32, i32
  }
  func.func @transform_1(%arg0: i32, %arg1: i32) -> (i32, i32, i32) {
    %c0_i32 = arith.constant 0 : i32
    %c0_i32_0 = arith.constant 0 : i32
    return %arg0, %arg1, %c0_i32 : i32, i32, i32
  }
  func.func @transform_2(%arg0: i32, %arg1: i32) -> (i32, i32) {
    %c0_i32 = arith.constant 0 : i32
    return %arg0, %arg1 : i32, i32
  }
  func.func @transform_3(%arg0: i32, %arg1: i32) -> (i32, i32) {
    %c0_i32 = arith.constant 0 : i32
    return %arg0, %arg1 : i32, i32
  }
  func.func @transform_4(%arg0: i32, %arg1: i32) -> (i32, i32) {
    %c0_i32 = arith.constant 0 : i32
    return %arg0, %arg1 : i32, i32
  }
  func.func @transform_5(%arg0: i32, %arg1: i32) -> (i32, i32) {
    %c0_i32 = arith.constant 0 : i32
    %c0_i32_0 = arith.constant 0 : i32
    %c0_i32_1 = arith.constant 0 : i32
    return %c0_i32, %c0_i32_0 : i32, i32
  }
  func.func @transform_6(%arg0: i32, %arg1: i32) -> (i32, i32) {
    %c0_i32 = arith.constant 0 : i32
    %c0_i32_0 = arith.constant 0 : i32
    return %arg0, %c0_i32 : i32, i32
  }
  func.func @transform_7(%arg0: i32, %arg1: i32) -> (i32, i32) {
    %c0_i32 = arith.constant 0 : i32
    %c0_i32_0 = arith.constant 0 : i32
    return %arg1, %c0_i32 : i32, i32
  }
  func.func @transform_8(%arg0: i32, %arg1: i32) -> (i32, i32) {
    %c0_i32 = arith.constant 0 : i32
    %c0_i32_0 = arith.constant 0 : i32
    %c0_i32_1 = arith.constant 0 : i32
    return %c0_i32, %c0_i32_0 : i32, i32
  }
  func.func @transform_9(%arg0: i32, %arg1: i32) -> (i32, i32) {
    %c0_i32 = arith.constant 0 : i32
    %c0_i32_0 = arith.constant 0 : i32
    %c0_i32_1 = arith.constant 0 : i32
    return %c0_i32, %c0_i32_0 : i32, i32
  }
  func.func @transform_10(%arg0: i32, %arg1: i32) -> (i32, i32, i32) {
    %c0_i32 = arith.constant 0 : i32
    %c0_i32_0 = arith.constant 0 : i32
    return %arg0, %arg1, %c0_i32 : i32, i32, i32
  }
}

</mosaic_0001>

<bundles_post_ra>
// kernel: sparse_matrix_equivariant_shared_block.1
= control target key start
LH: loop header
LB: loop body
LE: loop exit
PB: predicated region body
PF: predicated region fallthrough
CT: control target
= control target key end

     0   :  { %s4461_s0 = inlined_call_operand.hbm [shape: f32[16,16,128], index: 0, kind: input, shape index: {}]   ;;  %s4462_s1 = inlined_call_operand.hbm [shape: f32[16,16,128], index: 1, kind: input, shape index: {}]   ;;  %s4463_s2 = inlined_call_operand.hbm [shape: f32[16,16], index: 2, kind: input, shape index: {}]   ;;  %s4464_s3 = inlined_call_operand.hbm [shape: f32[16,16], index: 3, kind: input, shape index: {}]   ;;  %s4465_s4 = inlined_call_operand.hbm [shape: f32[16,16], index: 4, kind: input, shape index: {}]   ;;  %s4466_s5 = inlined_call_operand.hbm [shape: f32[256,128], index: 5, kind: input, shape index: {}]   ;;  %s4467_s6 = inlined_call_operand.hbm [shape: f32[16,640], index: 6, kind: input, shape index: {}, may-alias: {6,7}]   ;;  %s4468_s7 = inlined_call_operand.hbm [shape: f32[16,640], index: 7, kind: input, shape index: {}, may-alias: {6,7}]   ;;  %s4469_s8 = inlined_call_operand.hbm [shape: f32[640,256], index: 8, kind: input, shape index: {}]   ;;  %s4470_s9 = inlined_call_operand.hbm [shape: f32[640,128], index: 9, kind: input, shape index: {}]   ;;  %s4471_s10 = inlined_call_operand.hbm [shape: f32[16,16,128], index: 10, kind: output, shape index: {}]  }
   0x1   :  { %4502 = sst [smem:[#allocation44_spill]] %s4461_s0 }
   0x2   :  { %4503 = sst [smem:[#allocation45_spill]] %s4466_s5 }
   0x3   :  { %4504 = sst [smem:[#allocation46_spill]] %s4468_s7 }
   0x4   :  { %4505 = sst [smem:[#allocation47_spill]] %s4469_s8 }
   0x5   :  { %4506 = sst [smem:[#allocation48_spill]] %s4471_s10 }
   0x6   :  { %15 = vsyncpa [#allocation3], 0 }
   0x7   :  { %17 = vsyncpa [#allocation3 + $0x1], 0 }
   0x8   :  { %18 = vsyncpa [#allocation6], 0 }
   0x9   :  { %20 = vsyncpa [#allocation6 + $0x1], 0 }
   0xa   :  { %21 = vsyncpa [#allocation9], 0 }
   0xb   :  { %23 = vsyncpa [#allocation9 + $0x1], 0 }
   0xc   :  { %24 = vsyncpa [#allocation12], 0 }
   0xd   :  { %25 = vsyncpa [#allocation4], 0 }
   0xe   :  { %27 = vsyncpa [#allocation4 + $0x1], 0  ;;  %s3667_s13 = smov 0   ;;  %s3669_s14 = smov 0  }
   0xf   :  { %s3671_s15 = smov 0   ;;  %s3673_s16 = smov 0  }
  0x10   :  { %s3675_s17 = smov 0   ;;  %s3677_s18 = smov 0  }
  0x11 LB: > { %4507 = sst [smem:[#allocation27_spill]] %s3569_s13  ;;  %s3698_s19 = sadd.s32 4294967295, %s3589_s18   ;;  %s3589_s18 = sphi %s3677_s18, %s33_s18   ;;  %s3585_s17 = sphi %s3675_s17, %s4579_s17   ;;  %s3581_s16 = sphi %s3673_s16, %s4578_s16   ;;  %s3577_s15 = sphi %s3671_s15, %s4576_s15   ;;  %s3573_s14 = sphi %s3669_s14, %s4575_s14   ;;  %s3569_s13 = sphi %s3667_s13, %s4574_s13  }
  0x12   : > { %4508 = sst [smem:[#allocation28_spill]] %s3573_s14  ;;  %s2498_s20 = sadd.s32 4294967294, %s3589_s18  }
  0x13   : > { %4509 = sst [smem:[#allocation29_spill]] %s3577_s15  ;;  %p67_p0 = scmp.ne.s32.totalorder %s3573_s14, %s3569_s13 }
  0x14   : > { %4510 = sst [smem:[#allocation30_spill]] %s3581_s16  ;;  %p4473_p1 = scmp.eq.s32.totalorder %s3698_s19, 0 }
  0x15   : > { %4511 = sst [smem:[#allocation31_spill]] %s3589_s18  ;;  %p326_p3 = scmp.eq.s32.totalorder %s2498_s20, 1 }
  0x16   : > { %4512 = sst [smem:[#allocation32_spill]] %s3698_s19  ;;  %p3707_p4 = por %p4473_p1, %p67_p0 }
  0x17   : > { %p2499_p5 = scmp.ge.s32.totalorder %s3589_s18, 1  ;;  %p3712_p6 = por %p326_p3, %p67_p0 }
  0x18   : > { %s4513_s21 = scalar_select %p3707_p4, 1, 0 }
  0x19   : > { %s4515_s22 = scalar_select %p3712_p6, 1, 0 }
  0x1a   : > { %4514 = sst [smem:[#allocation33_spill]] %s4513_s21  ;;  %p333_p7 = scmp.lt.s32.totalorder %s3589_s18, 3 }
  0x1b   : > { %4516 = sst [smem:[#allocation34_spill]] %s4515_s22  ;;  %s3591_s24 = smov [#allocation14]  }
  0x1c   : > { %p3717_p8 = pnand %p2499_p5, %p333_p7  ;;  %s362_s25 = sshll.u32 %s3591_s24, 4  ;;  %s3721_s25 = int_to_ptr.vmem [resolvable:$true] %s362_s25 }
  0x1d   : > { %s3592_s27 = smov [#allocation15]   ;;  %s4519_s7 = sld [smem:[#allocation46_spill]] }
  0x1e   : > { %s4517_s23 = scalar_select %p3717_p8, 1, 0 }
  0x1f   : > { %p3079_p9 = pneg %p3717_p8  ;;  %s375_s28 = sshll.u32 %s3592_s27, 4  ;;  %s3732_s28 = int_to_ptr.vmem [resolvable:$true] %s375_s28 }
  0x21   : > { %p3728_p11 = pnand %p3079_p9, %p4473_p1 }
  0x23   : > { %s4518_s26 = scalar_select %p3728_p11, 1, 0 }
  0x24   : > { %s3187_s11 = scalar_lea.hbm %s4519_s7, 1280  ;;  %p3742_p13 = pneg %p3728_p11 }
  0x25   : > { %p3188_p12 = scmp.ne.s32.totalorder %s4519_s7, %s3187_s11  ;;  %p3194_p5 = scmp.lt.u32.totalorder %s3187_s11, %s4519_s7 }
  0x26   : > { %s4520_s24 = scalar_select %p3742_p13, 1, 0 }
  0x27   : > { %p3190_p0 = pnand %p3742_p13, %p3188_p12 }
  0x29   : > { %p3191_p3 = pneg %p3190_p0 }
  0x2b   : > { %p3196_p7 = pnand %p3194_p5, %p3191_p3 }
  0x2d   : > { %3199 = shalt.err (!%p3196_p7)
}
  0x2e   : > { %s3200_s29 = scalar_lea.vmem %s3721_s25, 1280  ;;  %p3208_p2 = scmp.lt.s32.totalorder %s3721_s25, %s3721_s25 }
  0x2f   : > { %p3201_p9 = scmp.ne.s32.totalorder %s3721_s25, %s3200_s29  ;;  %p3209_p6 = scmp.lt.s32.totalorder %s3200_s29, %s3200_s29 }
  0x31   : > { %p3203_p10 = pnand %p3201_p9, %p3742_p13  ;;  %p3210_p12 = por %p3209_p6, %p3208_p2 }
  0x33   : > { %p3204_p1 = pneg %p3203_p10 }
  0x35   : > { %p3211_p0 = pnand %p3210_p12, %p3204_p1 }
  0x37   : > { %3214 = shalt.err (!%p3211_p0)
}
  0x38   : > { %s3593_s30 = smov 640   ;;  %s3594_s22 = smov 40  }
  0x39   : > { %3085 = dma.hbm_to_vmem [thread:$0]  (!%p3728_p11), %s4519_s7, 1280, %s3721_s25, [#allocation6], %s3593_s30, %s3593_s30, %s3594_s22  }
  0x3a   : > { %s4521_s8 = sld [smem:[#allocation47_spill]] }
  0x40   : > { %s3215_s13 = scalar_lea.hbm %s4521_s8, 20480 }
  0x41   : > { %p3216_p2 = scmp.ne.s32.totalorder %s4521_s8, %s3215_s13  ;;  %p3222_p10 = scmp.lt.u32.totalorder %s3215_s13, %s4521_s8 }
  0x43   : > { %p3218_p1 = pnand %p3216_p2, %p3742_p13 }
  0x45   : > { %p3219_p6 = pneg %p3218_p1 }
  0x47   : > { %p3224_p3 = pnand %p3222_p10, %p3219_p6 }
  0x49   : > { %3227 = shalt.err (!%p3224_p3)
}
  0x4a   : > { %s3228_s25 = scalar_lea.vmem %s3732_s28, 20480  ;;  %p3236_p12 = scmp.lt.s32.totalorder %s3732_s28, %s3732_s28 }
  0x4b   : > { %p3229_p5 = scmp.ne.s32.totalorder %s3732_s28, %s3228_s25  ;;  %p3237_p0 = scmp.lt.s32.totalorder %s3228_s25, %s3228_s25 }
  0x4d   : > { %p3231_p7 = pnand %p3229_p5, %p3742_p13  ;;  %p3238_p2 = por %p3237_p0, %p3236_p12 }
  0x4f   : > { %p3232_p9 = pneg %p3231_p7 }
  0x51   : > { %p3239_p1 = pnand %p3238_p2, %p3232_p9 }
  0x53   : > { %3242 = shalt.err (!%p3239_p1)
}
  0x54   : > { %s3595_s10 = smov 256   ;;  %s3596_s13 = smov 16  }
  0x55   : > { %3088 = dma.hbm_to_vmem [thread:$0]  (!%p3728_p11), %s4521_s8, 20480, %s3732_s28, [#allocation9], %s3595_s10, %s3595_s10, %s3596_s13  }
  0x56   : > { %s3597_s30 = smov [#allocation11]   ;;  %s4522_s5 = sld [smem:[#allocation45_spill]] }
  0x57   : > { %s345_s22 = sshll.u32 %s3597_s30, 4  ;;  %s346_s22 = int_to_ptr.vmem [resolvable:$true] %s345_s22 }
  0x5c   : > { %s3243_s20 = scalar_lea.hbm %s4522_s5, 4096 }
  0x5d   : > { %p3244_p6 = scmp.ne.s32.totalorder %s4522_s5, %s3243_s20  ;;  %p3250_p5 = scmp.lt.u32.totalorder %s3243_s20, %s4522_s5 }
  0x5f   : > { %p3246_p10 = pnand %p3244_p6, %p3742_p13 }
  0x61   : > { %p3247_p3 = pneg %p3246_p10 }
  0x63   : > { %p3252_p7 = pnand %p3250_p5, %p3247_p3 }
  0x65   : > { %3255 = shalt.err (!%p3252_p7)
}
  0x66   : > { %s3256_s28 = scalar_lea.vmem %s346_s22, 4096  ;;  %p3264_p2 = scmp.lt.s32.totalorder %s346_s22, %s346_s22 }
  0x67   : > { %p3257_p9 = scmp.ne.s32.totalorder %s346_s22, %s3256_s28  ;;  %p3265_p1 = scmp.lt.s32.totalorder %s3256_s28, %s3256_s28 }
  0x69   : > { %p3259_p12 = pnand %p3257_p9, %p3742_p13  ;;  %p3266_p4 = por %p3265_p1, %p3264_p2 }
  0x6b   : > { %p3260_p0 = pneg %p3259_p12 }
  0x6d   : > { %p3267_p8 = pnand %p3266_p4, %p3260_p0 }
  0x6f   : > { %3270 = shalt.err (!%p3267_p8)
}
  0x70   : > { %s4481_s10 = smov 128   ;;  %s4483_s7 = smov 8  }
  0x71   : > { %3082 = dma.hbm_to_vmem [thread:$0]  (!%p3728_p11), %s4522_s5, 4096, %s346_s22, [#allocation12], %s4481_s10, %s4481_s10, %s4483_s7  }
  0x72   : > { %s54_s21 = sadd.s32 1, %s3577_s15  ;;  %s45_s30 = sadd.s32 1, %s3585_s17 }
  0x73   : > { %p61_p4 = scmp.ne.s32.totalorder %s3577_s15, %s3573_s14  ;;  %p47_p8 = scmp.ge.s32.totalorder %s45_s30, 2 }
  0x74   : > { %p62_p6 = scmp.eq.s32.totalorder %s3589_s18, 0  ;;  %p4523_p10 = scmp.eq.s32.totalorder %s3698_s19, 1 }
  0x75   : > { %p3119_p5 = scmp.lt.s32.totalorder %s3589_s18, 2  ;;  %s4581_s30 = smov (%p47_p8, %s45_s30), 0 }
  0x76   : > { %p3814_p3 = por %p4523_p10, %p61_p4  ;;  %4526 = sst [smem:[#allocation36_spill]] %s4581_s30 }
  0x77   : > { %p63_p7 = por %p62_p6, %p61_p4  ;;  %s3822_s12 = sand.u32 1, %s3589_s18  }
  0x78   : > { %s4524_s11 = scalar_select %p3814_p3, 1, 0 }
  0x79   : > { %s49_s22 = ssub.s32 %s3585_s17, %s4581_s30  ;;  %s3827_s20 = sand.u32 1, %s3577_s15  }
  0x7a   : > { %4525 = sst [smem:[#allocation35_spill]] %s4524_s11  ;;  %p52_p9 = scmp.eq.s32.totalorder %s49_s22, 0 }
  0x7b   : > { %s4485_s27 = sshll.u32 %s3827_s20, 7  ;;  %s2540_s29 = sshll.u32 %s3585_s17, 11 }
  0x7c   : > { %s3832_s25 = scalar_select %p52_p9, %s3577_s15, %s54_s21  }
  0x7d   : > { %s4528_s0 = sld [smem:[#allocation44_spill]]  ;;  %s406_s10 = scalar_lea.vmem [#allocation2], %s4485_s27 }
  0x7e   : > { %4527 = sst [smem:[#allocation37_spill]] %s3832_s25  ;;  %s416_s22 = sshll.u32 %s406_s10, 4  ;;  %s3847_s22 = int_to_ptr.vmem [resolvable:$true] %s416_s22 }
  0x7f   : > { %p3843_p12 = pnand %p3119_p5, %p63_p7  ;;  %s3852_s28 = scalar_lea.hbm %s4462_s1, %s2540_s29 }
  0x80   : > { %s4499_s13 = scalar_lea.sflag [#allocation3], %s3822_s12 }
  0x81   : > { %s4529_s7 = scalar_select %p3843_p12, 1, 0 }
  0x82   : > { %p3859_p2 = pneg %p3843_p12 }
  0x83   : > { %s3837_s16 = scalar_lea.hbm %s4528_s0, %s2540_s29  ;;  %s3276_s25 = scalar_lea.hbm %s4528_s0, 4096 }
  0x84   : > { %s3271_s8 = scalar_lea.hbm %s3837_s16, 2048  ;;  %p3277_p8 = scmp.lt.u32.totalorder %s3837_s16, %s4528_s0 }
  0x85   : > { %p3272_p0 = scmp.ne.s32.totalorder %s3837_s16, %s3271_s8  ;;  %p3278_p6 = scmp.lt.u32.totalorder %s3276_s25, %s3271_s8 }
  0x86   : > { %p3280_p5 = scmp.lt.u32.totalorder %s3271_s8, %s3837_s16 }
  0x87   : > { %p3274_p1 = pnand %p3859_p2, %p3272_p0  ;;  %p3279_p10 = por %p3278_p6, %p3277_p8 }
  0x89   : > { %p3275_p4 = pneg %p3274_p1  ;;  %p3281_p7 = por %p3280_p5, %p3279_p10 }
  0x8b   : > { %p3282_p9 = pnand %p3281_p7, %p3275_p4 }
  0x8d   : > { %3285 = shalt.err (!%p3282_p9)
}
  0x8e   : > { %s3286_s29 = scalar_lea.vmem %s3847_s22, 2048  ;;  %s3600_s30 = smov [#allocation2]  }
  0x8f   : > { %p3287_p0 = scmp.ne.s32.totalorder %s3847_s22, %s3286_s29  ;;  %s3291_s21 = sshll.u32 %s3600_s30, 4  ;;  %s3292_s21 = int_to_ptr.vmem [resolvable:$false] %s3291_s21 }
  0x90   : > { %s3293_s15 = scalar_lea.vmem %s3292_s21, 4096  ;;  %p3294_p11 = scmp.lt.s32.totalorder %s3847_s22, %s3292_s21 }
  0x91   : > { %p3289_p1 = pnand %p3287_p0, %p3859_p2  ;;  %p3295_p13 = scmp.lt.s32.totalorder %s3293_s15, %s3286_s29 }
  0x93   : > { %p3290_p3 = pneg %p3289_p1  ;;  %p3296_p8 = por %p3295_p13, %p3294_p11 }
  0x95   : > { %p3297_p6 = pnand %p3296_p8, %p3290_p3 }
  0x97   : > { %3300 = shalt.err (!%p3297_p6)
}
  0x98   : > { %s4531_s8 = smov 8   ;;  %s4532_s25 = smov 128  }
  0x99   : > { %3095 = dma.hbm_to_vmem [thread:$0]  (!%p3843_p12), %s3837_s16, 2048, %s3847_s22, %s4499_s13, %s4532_s25, %s4532_s25, %s4531_s8  }
  0x9a   : > { %s4533_s10 = sshll.u32 %s3827_s20, 7  ;;  %s3892_s30 = sshll.u32 %s3827_s20, 3 }
  0x9b   : > { %s430_s5 = scalar_lea.vmem [#allocation5], %s4533_s10  ;;  %s427_s21 = scalar_lea.sflag [#allocation6], %s3822_s12 }
  0x9c   : > { %s440_s29 = sshll.u32 %s430_s5, 4  ;;  %s3301_s15 = scalar_lea.hbm %s3852_s28, 2048  ;;  %s3889_s29 = int_to_ptr.vmem [resolvable:$true] %s440_s29 }
  0x9d   : > { %p3302_p11 = scmp.ne.s32.totalorder %s3852_s28, %s3301_s15  ;;  %s3306_s11 = scalar_lea.hbm %s4462_s1, 4096 }
  0x9e   : > { %p3307_p4 = scmp.lt.u32.totalorder %s3852_s28, %s4462_s1  ;;  %p3308_p10 = scmp.lt.u32.totalorder %s3306_s11, %s3301_s15 }
  0x9f   : > { %p3304_p13 = pnand %p3302_p11, %p3859_p2  ;;  %p3310_p7 = scmp.lt.u32.totalorder %s3301_s15, %s3852_s28 }
  0xa0   : > { %p3309_p5 = por %p3308_p10, %p3307_p4 }
  0xa1   : > { %p3305_p3 = pneg %p3304_p13 }
  0xa2   : > { %p3311_p9 = por %p3310_p7, %p3309_p5 }
  0xa4   : > { %p3312_p0 = pnand %p3311_p9, %p3305_p3 }
  0xa6   : > { %3315 = shalt.err (!%p3312_p0)
}
  0xa7   : > { %s3316_s16 = scalar_lea.vmem %s3889_s29, 2048  ;;  %s3601_s0 = smov [#allocation5]  }
  0xa8   : > { %p3317_p1 = scmp.ne.s32.totalorder %s3889_s29, %s3316_s16  ;;  %s3321_s18 = sshll.u32 %s3601_s0, 4  ;;  %s3322_s18 = int_to_ptr.vmem [resolvable:$false] %s3321_s18 }
  0xa9   : > { %s3323_s14 = scalar_lea.vmem %s3322_s18, 4096  ;;  %p3324_p11 = scmp.lt.s32.totalorder %s3889_s29, %s3322_s18 }
  0xaa   : > { %p3319_p8 = pnand %p3317_p1, %p3859_p2  ;;  %p3325_p13 = scmp.lt.s32.totalorder %s3323_s14, %s3316_s16 }
  0xac   : > { %p3320_p6 = pneg %p3319_p8  ;;  %p3326_p4 = por %p3325_p13, %p3324_p11 }
  0xae   : > { %p3327_p10 = pnand %p3326_p4, %p3320_p6 }
  0xb0   : > { %3330 = shalt.err (!%p3327_p10)
}
  0xb1   : > { %3098 = dma.hbm_to_vmem [thread:$0]  (!%p3843_p12), %s3852_s28, 2048, %s3889_s29, %s427_s21, %s4532_s25, %s4532_s25, %s4531_s8  }
  0xb2   : > { %s3922_s19 = sshll.u32 %s3585_s17, 7  ;;  %s473_s5 = scalar_lea.vmem [#allocation8], %s3892_s30 }
  0xb3   : > { %s3928_s10 = scalar_lea.hbm %s4464_s3, %s3922_s19  ;;  %s481_s15 = sshll.u32 %s473_s5, 4  ;;  %s3931_s15 = int_to_ptr.vmem [resolvable:$true] %s481_s15 }
  0xb4   : > { %s3602_s16 = smov [#allocation16]   ;;  %s470_s28 = scalar_lea.sflag [#allocation9], %s3822_s12 }
  0xb5   : > { %s3933_s0 = sshll.u32 %s3602_s16, 4  ;;  %s3331_s29 = scalar_lea.hbm %s3928_s10, 128  ;;  %s389_s0 = int_to_ptr.vmem [resolvable:$true] %s3933_s0 }
  0xb6   : > { %p3332_p3 = scmp.ne.s32.totalorder %s3928_s10, %s3331_s29  ;;  %s3336_s11 = scalar_lea.hbm %s4464_s3, 256 }
  0xb7   : > { %p3337_p9 = scmp.lt.u32.totalorder %s3928_s10, %s4464_s3  ;;  %p3338_p0 = scmp.lt.u32.totalorder %s3336_s11, %s3331_s29 }
  0xb8   : > { %p3334_p5 = pnand %p3332_p3, %p3859_p2  ;;  %p3340_p8 = scmp.lt.u32.totalorder %s3331_s29, %s3928_s10 }
  0xb9   : > { %p3339_p1 = por %p3338_p0, %p3337_p9 }
  0xba   : > { %p3335_p7 = pneg %p3334_p5 }
  0xbb   : > { %p3341_p6 = por %p3340_p8, %p3339_p1 }
  0xbd   : > { %p3342_p11 = pnand %p3341_p6, %p3335_p7 }
  0xbf   : > { %3345 = shalt.err (!%p3342_p11)
}
  0xc0   : > { %s3346_s5 = scalar_lea.vmem %s3931_s15, 128  ;;  %s3603_s16 = smov [#allocation8]  }
  0xc1   : > { %p3347_p13 = scmp.ne.s32.totalorder %s3931_s15, %s3346_s5  ;;  %s3351_s18 = sshll.u32 %s3603_s16, 4  ;;  %s3352_s18 = int_to_ptr.vmem [resolvable:$false] %s3351_s18 }
  0xc2   : > { %s3353_s13 = scalar_lea.vmem %s3352_s18, 256  ;;  %p3354_p3 = scmp.lt.s32.totalorder %s3931_s15, %s3352_s18 }
  0xc3   : > { %p3349_p4 = pnand %p3347_p13, %p3859_p2  ;;  %p3355_p5 = scmp.lt.s32.totalorder %s3353_s13, %s3346_s5 }
  0xc5   : > { %p3350_p10 = pneg %p3349_p4  ;;  %p3356_p9 = por %p3355_p5, %p3354_p3 }
  0xc7   : > { %p3357_p0 = pnand %p3356_p9, %p3350_p10 }
  0xc9   : > { %3360 = shalt.err (!%p3357_p0)
}
  0xca   : > { %3104 = dma.hbm_to_vmem [thread:$0]  (!%p3843_p12), %s3928_s10, 128, %s3931_s15, %s470_s28  }
  0xcb   : > { %s3361_s11 = scalar_lea.hbm %s4470_s9, 10240  ;;  %p4534_p1 = scmp.ne.s32.totalorder %s4520_s24, 0 }
  0xcc   : > { %p3362_p7 = scmp.ne.s32.totalorder %s4470_s9, %s3361_s11  ;;  %p3368_p11 = scmp.lt.u32.totalorder %s3361_s11, %s4470_s9 }
  0xce   : > { %p3364_p8 = pnand %p3362_p7, %p4534_p1 }
  0xd0   : > { %p3365_p6 = pneg %p3364_p8 }
  0xd2   : > { %p3370_p13 = pnand %p3368_p11, %p3365_p6 }
  0xd4   : > { %3373 = shalt.err (!%p3370_p13)
}
  0xd5   : > { %s3374_s13 = scalar_lea.vmem %s389_s0, 10240  ;;  %p3382_p5 = scmp.lt.s32.totalorder %s389_s0, %s389_s0 }
  0xd6   : > { %p3375_p4 = scmp.ne.s32.totalorder %s389_s0, %s3374_s13  ;;  %p3383_p9 = scmp.lt.s32.totalorder %s3374_s13, %s3374_s13 }
  0xd8   : > { %p3377_p10 = pnand %p3375_p4, %p4534_p1  ;;  %p3384_p0 = por %p3383_p9, %p3382_p5 }
  0xda   : > { %p3378_p3 = pneg %p3377_p10 }
  0xdc   : > { %p3385_p12 = pnand %p3384_p0, %p3378_p3 }
  0xde   : > { %3388 = shalt.err (!%p3385_p12)
}
  0xdf   : > { %p4535_p7 = scmp.ne.s32.totalorder %s4518_s26, 0  ;;  %s3985_s14 = scalar_lea.hbm %s4463_s2, %s3922_s19 }
  0xe0   : > { %s454_s26 = scalar_lea.vmem [#allocation7], %s3892_s30  ;;  %s3389_s22 = scalar_lea.hbm %s3985_s14, 128 }
  0xe1   : > { %3091 = dma.hbm_to_vmem [thread:$0]  (!%p4535_p7), %s4470_s9, 10240, %s389_s0, [#allocation12], %s4532_s25, %s4532_s25, %s4531_s8  }
  0xe2   : > { %s462_s11 = sshll.u32 %s454_s26, 4  ;;  %p3390_p12 = scmp.ne.s32.totalorder %s3985_s14, %s3389_s22  ;;  %s463_s11 = int_to_ptr.vmem [resolvable:$true] %s462_s11 }
  0xe3   : > { %s3394_s8 = scalar_lea.hbm %s4463_s2, 256  ;;  %p3395_p6 = scmp.lt.u32.totalorder %s3985_s14, %s4463_s2 }
  0xe4   : > { %p3392_p1 = pnand %p3390_p12, %p3859_p2  ;;  %p3396_p11 = scmp.lt.u32.totalorder %s3394_s8, %s3389_s22 }
  0xe5   : > { %p3398_p4 = scmp.lt.u32.totalorder %s3389_s22, %s3985_s14 }
  0xe6   : > { %p3393_p8 = pneg %p3392_p1  ;;  %p3397_p13 = por %p3396_p11, %p3395_p6 }
  0xe8   : > { %p3399_p10 = por %p3398_p4, %p3397_p13 }
  0xea   : > { %p3400_p3 = pnand %p3399_p10, %p3393_p8 }
  0xec   : > { %3403 = shalt.err (!%p3400_p3)
}
  0xed   : > { %s3404_s18 = scalar_lea.vmem %s463_s11, 128  ;;  %s3604_s13 = smov [#allocation7]  }
  0xee   : > { %p3405_p5 = scmp.ne.s32.totalorder %s463_s11, %s3404_s18  ;;  %s3409_s10 = sshll.u32 %s3604_s13, 4  ;;  %s3410_s10 = int_to_ptr.vmem [resolvable:$false] %s3409_s10 }
  0xef   : > { %s3411_s15 = scalar_lea.vmem %s3410_s10, 256  ;;  %p3412_p7 = scmp.lt.s32.totalorder %s463_s11, %s3410_s10 }
  0xf0   : > { %p3407_p9 = pnand %p3405_p5, %p3859_p2  ;;  %p3413_p12 = scmp.lt.s32.totalorder %s3411_s15, %s3404_s18 }
  0xf2   : > { %p3408_p0 = pneg %p3407_p9  ;;  %p3414_p1 = por %p3413_p12, %p3412_p7 }
  0xf4   : > { %p3415_p6 = pnand %p3414_p1, %p3408_p0 }
  0xf6   : > { %3418 = shalt.err (!%p3415_p6)
}
  0xf7   : > { %p4536_p11 = scmp.ne.s32.totalorder %s4529_s7, 0  ;;  %s4011_s26 = scalar_lea.hbm %s4465_s4, %s3922_s19 }
  0xf8   : > { %s492_s22 = scalar_lea.vmem [#allocation10], %s3892_s30  ;;  %s3046_s5 = smul.u32 40, %s3827_s20 }
  0xf9   : > { %3101 = dma.hbm_to_vmem [thread:$0]  (!%p4536_p11), %s3985_s14, 128, %s463_s11, %s427_s21  }
  0xfa   : > { %s500_s16 = sshll.u32 %s492_s22, 4  ;;  %s3419_s8 = scalar_lea.hbm %s4011_s26, 128  ;;  %s501_s16 = int_to_ptr.vmem [resolvable:$true] %s500_s16 }
  0xfb   : > { %p3420_p8 = scmp.ne.s32.totalorder %s4011_s26, %s3419_s8  ;;  %s3424_s14 = scalar_lea.hbm %s4465_s4, 256 }
  0xfc   : > { %p3425_p10 = scmp.lt.u32.totalorder %s4011_s26, %s4465_s4  ;;  %p3426_p3 = scmp.lt.u32.totalorder %s3424_s14, %s3419_s8 }
  0xfd   : > { %p3422_p13 = pnand %p3420_p8, %p3859_p2  ;;  %p3428_p9 = scmp.lt.u32.totalorder %s3419_s8, %s4011_s26 }
  0xfe   : > { %p3427_p5 = por %p3426_p3, %p3425_p10 }
  0xff   : > { %p3423_p4 = pneg %p3422_p13 }
 0x100   : > { %p3429_p0 = por %p3428_p9, %p3427_p5 }
 0x102   : > { %p3430_p7 = pnand %p3429_p0, %p3423_p4 }
 0x104   : > { %3433 = shalt.err (!%p3430_p7)
}
 0x105   : > { %s3434_s20 = scalar_lea.vmem %s501_s16, 128  ;;  %s3605_s30 = smov [#allocation10]  }
 0x106   : > { %p3435_p12 = scmp.ne.s32.totalorder %s501_s16, %s3434_s20  ;;  %s3439_s0 = sshll.u32 %s3605_s30, 4  ;;  %s3440_s0 = int_to_ptr.vmem [resolvable:$false] %s3439_s0 }
 0x107   : > { %s3441_s18 = scalar_lea.vmem %s3440_s0, 256  ;;  %p3442_p8 = scmp.lt.s32.totalorder %s501_s16, %s3440_s0 }
 0x108   : > { %p3437_p1 = pnand %p3435_p12, %p3859_p2  ;;  %p3443_p13 = scmp.lt.s32.totalorder %s3441_s18, %s3434_s20 }
 0x10a   : > { %p3438_p6 = pneg %p3437_p1  ;;  %p3444_p11 = por %p3443_p13, %p3442_p8 }
 0x10c   : > { %p3445_p3 = pnand %p3444_p11, %p3438_p6 }
 0x10e   : > { %3448 = shalt.err (!%p3445_p3)
}
 0x10f   : > { %p4537_p10 = scmp.ne.s32.totalorder %s4529_s7, 0  ;;  %s3047_s13 = smul.u32 640, %s3585_s17 }
 0x110   : > { %s511_s10 = scalar_lea.vmem [#allocation13], %s3046_s5  ;;  %s3454_s14 = scalar_lea.hbm %s4467_s6, 1280 }
 0x111   : > { %3107 = dma.hbm_to_vmem [thread:$0]  (!%p4537_p10), %s4011_s26, 128, %s501_s16, %s470_s28  }
 0x112   : > { %s519_s15 = sshll.u32 %s511_s10, 4  ;;  %s517_s22 = scalar_lea.hbm %s4467_s6, %s3047_s13  ;;  %s520_s15 = int_to_ptr.vmem [resolvable:$true] %s519_s15 }
 0x113   : > { %s3449_s8 = scalar_lea.hbm %s517_s22, 640  ;;  %p3455_p9 = scmp.lt.u32.totalorder %s517_s22, %s4467_s6 }
 0x114   : > { %p3450_p4 = scmp.ne.s32.totalorder %s517_s22, %s3449_s8  ;;  %p3456_p0 = scmp.lt.u32.totalorder %s3454_s14, %s3449_s8 }
 0x115   : > { %p3458_p12 = scmp.lt.u32.totalorder %s3449_s8, %s517_s22 }
 0x116   : > { %p3452_p11 = pnand %p3450_p4, %p3859_p2  ;;  %p3457_p7 = por %p3456_p0, %p3455_p9 }
 0x118   : > { %p3453_p5 = pneg %p3452_p11  ;;  %p3459_p1 = por %p3458_p12, %p3457_p7 }
 0x11a   : > { %p3460_p6 = pnand %p3459_p1, %p3453_p5 }
 0x11c   : > { %3463 = shalt.err (!%p3460_p6)
}
 0x11d   : > { %s3464_s28 = scalar_lea.vmem %s520_s15, 640  ;;  %s3606_s26 = smov [#allocation13]  }
 0x11e   : > { %p3465_p8 = scmp.ne.s32.totalorder %s520_s15, %s3464_s28  ;;  %s3469_s16 = sshll.u32 %s3606_s26, 4  ;;  %s3470_s16 = int_to_ptr.vmem [resolvable:$false] %s3469_s16 }
 0x11f   : > { %s3471_s5 = scalar_lea.vmem %s3470_s16, 1280  ;;  %p3472_p4 = scmp.lt.s32.totalorder %s520_s15, %s3470_s16 }
 0x120   : > { %p3467_p13 = pnand %p3465_p8, %p3859_p2  ;;  %p3473_p11 = scmp.lt.s32.totalorder %s3471_s5, %s3464_s28 }
 0x122   : > { %p3468_p3 = pneg %p3467_p13  ;;  %p3474_p10 = por %p3473_p11, %p3472_p4 }
 0x124   : > { %p3475_p0 = pnand %p3474_p10, %p3468_p3 }
 0x126   : > { %3478 = shalt.err (!%p3475_p0)
}
 0x127   : > { %p4538_p9 = scmp.ne.s32.totalorder %s4529_s7, 0  ;;  %s4539_s20 = scalar_lea.sflag [#allocation3], %s3822_s12 }
 0x128   : > { %p4540_p5 = scmp.ne.s32.totalorder %s4517_s23, 0 }
 0x129   : > { %3110 = dma.hbm_to_vmem [thread:$0]  (!%p4538_p9), %s517_s22, 640, %s520_s15, %s4539_s20  }
 0x12a   : > { %528 = sbr.rel (%p4540_p5) target bundleno = 840 (0x348), region = 60 }
 0x131   : > { %s4541_s27 = sld [smem:[#allocation32_spill]]  ;;  %s4542_s30 = sld [smem:[#allocation28_spill]] }
 0x132   : > { %s4543_s0 = sld [smem:[#allocation33_spill]] }
 0x137   : > { %s530_s18 = sand.u32 1, %s4541_s27   ;;  %s4056_s13 = sand.u32 1, %s4542_s30  }
 0x138   : > { %s4059_s10 = sshll.u32 %s4056_s13, 7  ;;  %s531_s24 = scalar_lea.sflag [#allocation3], %s530_s18 }
 0x139   : > { %s4062_s29 = scalar_lea.vmem [#allocation2], %s4059_s10  ;;  %p4544_p2 = scmp.ne.s32.totalorder %s4543_s0, 0 }
 0x13b   : > { %3532 = dma.done.wait (%p4544_p2), %s531_s24, 2048  }
 0x13c   : > { %3534 = vsyncadd (%p4544_p2), %s531_s24, 4294965248  ;;  %s540_s23 = scalar_lea.sflag [#allocation6], %s530_s18  ;;  %s4069_s7 = scalar_lea.vmem [#allocation5], %s4059_s10 }
 0x13d   : > { %3536 = dma.done.wait (%p4544_p2), %s540_s23, 2176  }
 0x13e   : > { %3538 = vsyncadd (%p4544_p2), %s540_s23, 4294965120  ;;  %s4076_s12 = sshll.u32 %s4056_s13, 3  ;;  %s558_s22 = scalar_lea.sflag [#allocation9], %s530_s18 }
 0x13f   : > { %s552_s15 = scalar_lea.vmem [#allocation7], %s4076_s12  ;;  %s561_s8 = scalar_lea.vmem [#allocation8], %s4076_s12 }
 0x140   : > { %3540 = dma.done.wait (%p4544_p2), %s558_s22, 256  }
 0x141   : > { %3542 = vsyncadd (%p4544_p2), %s558_s22, 4294967040  ;;  %s570_s25 = scalar_lea.vmem [#allocation10], %s4076_s12  ;;  %p4545_p10 = scmp.eq.s32.totalorder %s4541_s27, 0 }
 0x143   : > { %3544 = dma.done.wait (%p4545_p10), [#allocation12], 4096   ;;  %p4546_p7 = pmov %p4545_p10 }
 0x144   : > { %s3048_s21 = smul.u32 40, %s4056_s13 }
 0x145   : > { %3546 = vsyncadd (%p4546_p7), [#allocation12], 4294963200 }
 0x146   : > { %s4090_s14 = scalar_lea.vmem [#allocation13], %s3048_s21 }
 0x147   : > { %3548 = dma.done.wait (%p4544_p2), %s531_s24, 640  }
 0x148   : > { %3550 = vsyncadd (%p4544_p2), %s531_s24, 4294966656  ;;  %p4547_p12 = pmov %p4546_p7 }
 0x149   : > { %p4548_p1 = pmov %p4546_p7 }
 0x14a   : > { %3552 = dma.done.wait (%p4547_p12), [#allocation6], 1280  }
 0x14b   : > { %3554 = vsyncadd (%p4548_p1), [#allocation6], 4294966016  ;;  %p4549_p6 = pmov %p4548_p1 }
 0x14c   : > { %p4550_p8 = pmov %p4548_p1 }
 0x14d   : > { %3556 = dma.done.wait (%p4549_p6), [#allocation9], 20480  }
 0x14e   : > { %3558 = vsyncadd (%p4550_p8), [#allocation9], 4294946816  ;;  %p4551_p13 = pmov %p4548_p1 }
 0x14f   : > { %p4552_p3 = pmov %p4548_p1 }
 0x150   : > { %3560 = dma.done.wait (%p4551_p13), [#allocation12], 10240  }
 0x151   : > { %3562 = vsyncadd (%p4552_p3), [#allocation12], 4294957056  ;;  %v665_v0 = vlaneseq  ;;  %v1089_v3 = vld [vmem:[#allocation15 + $0x8] sm:$0xff]  ;;  %v1091_v4 = vld [vmem:[#allocation15 + $0x18] sm:$0xff]  ;;  %s4553_s11 = sld [smem:[#allocation30_spill]]  ;;  %s4374_s28 = scalar_lea.vmem [#allocation17], %s4059_s10 }
 0x152   : > { %v4114_v5 = vld [vmem:[%s561_s8] sm:$0xff]  ;;  %v2786_v6 = vpack.c.bf16 %v1091_v4, %v1089_v3  ;;  %v1090_v9 = vld [vmem:[#allocation15 + $0x10] sm:$0xff]  ;;  %v1095_v12 = vld [vmem:[#allocation15 + $0x38] sm:$0xff]  ;;  %s2259_s16 = sshll.u32 %s4374_s28, 4  ;;  %s4566_s5 = sld [smem:[#allocation35_spill]]  ;;  %s4410_s16 = int_to_ptr.vmem [resolvable:$true] %s2259_s16 }
 0x153   : > { %v4109_v1 = vshrl.u32 %v665_v0, 7  ;;  %v1088_v8 = vld [vmem:[#allocation15] sm:$0xff]  ;;  %v1093_v10 = vld [vmem:[#allocation15 + $0x28] sm:$0xff]  ;;  %v4120_v13 = vld [vmem:[%s552_s15] sm:$0xff]  ;;  %s4567_s30 = sld [smem:[#allocation48_spill]]  ;;  %s2243_s18 = scalar_lea.sflag [#allocation4], %s4056_s13 }
 0x154   : > { %v2788_v11 = vpack.c.bf16 %v1090_v9, %v1088_v8  ;;  %v1092_v14 = vld [vmem:[#allocation15 + $0x20] sm:$0xff]  ;;  %2787 = vmatprep.subr.bf16.mxu1 %v2786_v6  ;;  %v2790_v15 = vpack.c.bf16 %v1095_v12, %v1093_v10  ;;  %v1094_v17 = vld [vmem:[#allocation15 + $0x30] sm:$0xff]  ;;  %v1097_v18 = vld [vmem:[#allocation15 + $0x48] sm:$0xff]  ;;  %s3479_s10 = scalar_lea.vmem %s4410_s16, 2048  ;;  %s3609_s24 = smov [#allocation17]  }
 0x155   : > { %v4112_v2 = vsub.s32 0, %v4109_v1  ;;  %v1099_v19 = vld [vmem:[#allocation15 + $0x58] sm:$0xff]  ;;  %v4125_v20 = vsub.s32 1, %v4109_v1  ;;  %v2792_v21 = vpack.c.bf16 %v1094_v17, %v1092_v14  ;;  %v1096_v23 = vld [vmem:[#allocation15 + $0x40] sm:$0xff]  ;;  %v1098_v24 = vld [vmem:[#allocation15 + $0x50] sm:$0xff]  ;;  %v4132_v35 = vsub.s32 2, %v4109_v1  ;;  %p3480_p4 = scmp.ne.s32.totalorder %s4410_s16, %s3479_s10 }
 0x156   : > { %2789 = vmatpush1.bf16.msra.mxu1 %v2788_v11  ;;  %v2794_v22 = vpack.c.bf16 %v1099_v19, %v1097_v18  ;;  %v1101_v25 = vld [vmem:[#allocation15 + $0x68] sm:$0xff]  ;;  %v1103_v26 = vld [vmem:[#allocation15 + $0x78] sm:$0xff]  ;;  %v2796_v28 = vpack.c.bf16 %v1098_v24, %v1096_v23  ;;  %v1100_v31 = vld [vmem:[#allocation15 + $0x60] sm:$0xff]  ;;  %v4139_v50 = vsub.s32 3, %v4109_v1  ;;  %v4147_v6 = vsub.s32 4, %v4109_v1 }
 0x157   : > { %v757_v7 = vrot.slane %v4114_v5, %v4112_v2  ;;  %v668_v16 = vrot.slane %v4120_v13, %v4112_v2  ;;  %2791 = vmatprep.subr.bf16.mxu1 %v2790_v15  ;;  %v768_v27 = vrot.slane %v4114_v5, %v4125_v20  ;;  %v679_v29 = vrot.slane %v4120_v13, %v4125_v20  ;;  %v1102_v32 = vld [vmem:[#allocation15 + $0x70] sm:$0xff]  ;;  %v1105_v33 = vld [vmem:[#allocation15 + $0x88] sm:$0xff]  ;;  %v1107_v34 = vld [vmem:[#allocation15 + $0x98] sm:$0xff]  ;;  %s2531_s19 = sshll.u32 %s4553_s11, 3  ;;  %s2544_s26 = sshll.u32 %s4553_s11, 11 }
 0x158   : > { %v2798_v30 = vpack.c.bf16 %v1103_v26, %v1101_v25  ;;  %v2800_v36 = vpack.c.bf16 %v1102_v32, %v1100_v31  ;;  %v2802_v37 = vpack.c.bf16 %v1107_v34, %v1105_v33  ;;  %v1104_v38 = vld [vmem:[#allocation15 + $0x80] sm:$0xff]  ;;  %v1106_v39 = vld [vmem:[#allocation15 + $0x90] sm:$0xff]  ;;  %v1109_v40 = vld [vmem:[#allocation15 + $0xa8] sm:$0xff]  ;;  %v779_v42 = vrot.slane %v4114_v5, %v4132_v35  ;;  %p4568_p11 = scmp.ne.s32.totalorder %s4566_s5, 0 }
 0x159   : > { %759 = vbcast.lane.b32.xlu0 %v757_v7, 256  ;;  %763 = vbcast.lane.b32.xlu1 %v757_v7, 264  ;;  %v1111_v41 = vld [vmem:[#allocation15 + $0xb8] sm:$0xff]  ;;  %v2804_v43 = vpack.c.bf16 %v1106_v39, %v1104_v38  ;;  %v690_v44 = vrot.slane %v4120_v13, %v4132_v35  ;;  %v1108_v46 = vld [vmem:[#allocation15 + $0xa0] sm:$0xff]  ;;  %v1110_v47 = vld [vmem:[#allocation15 + $0xb0] sm:$0xff]  ;;  %v790_v58 = vrot.slane %v4114_v5, %v4139_v50  ;;  %v4154_v33 = vsub.s32 5, %v4109_v1  ;;  %s4408_s0 = scalar_lea.hbm %s4567_s30, %s2544_s26 }
 0x15a   : > { %2793 = vmatpush1.bf16.msra.mxu1 %v2792_v21  ;;  %v2806_v45 = vpack.c.bf16 %v1111_v41, %v1109_v40  ;;  %v1113_v48 = vld [vmem:[#allocation15 + $0xc8] sm:$0xff]  ;;  %v1115_v49 = vld [vmem:[#allocation15 + $0xd8] sm:$0xff]  ;;  %v2808_v51 = vpack.c.bf16 %v1110_v47, %v1108_v46  ;;  %v1112_v53 = vld [vmem:[#allocation15 + $0xc0] sm:$0xff]  ;;  %v701_v60 = vrot.slane %v4120_v13, %v4139_v50  ;;  %v801_v15 = vrot.slane %v4114_v5, %v4147_v6  ;;  %p3481_p0 = pnand %p3480_p4, %p4568_p11 }
 0x15b   : > { %2795 = vmatprep.subr.bf16.mxu1 %v2794_v22  ;;  %v2810_v52 = vpack.c.bf16 %v1115_v49, %v1113_v48  ;;  %v1114_v54 = vld [vmem:[#allocation15 + $0xd0] sm:$0xff]  ;;  %v1117_v55 = vld [vmem:[#allocation15 + $0xe8] sm:$0xff]  ;;  %v1119_v56 = vld [vmem:[#allocation15 + $0xf8] sm:$0xff]  ;;  %v712_v18 = vrot.slane %v4120_v13, %v4147_v6  ;;  %v812_v49 = vrot.slane %v4114_v5, %v4154_v33 }
 0x15c   : > { %v1084_v57 = vld [vmem:[%s4090_s14 + $0x8] sm:$0xff]  ;;  %v2812_v59 = vpack.c.bf16 %v1114_v54, %v1112_v53  ;;  %v2814_v61 = vpack.c.bf16 %v1119_v56, %v1117_v55  ;;  %v1116_v62 = vld [vmem:[#allocation15 + $0xe0] sm:$0xff]  ;;  %v1123_v4 = vld [vmem:[#allocation15 + $0x118] sm:$0xff]  ;;  %v723_v54 = vrot.slane %v4120_v13, %v4154_v33  ;;  %p3482_p9 = pneg %p3481_p0 }
 0x15d   : > { %670 = vbcast.lane.b32.xlu0 %v668_v16, 256  ;;  %674 = vbcast.lane.b32.xlu1 %v668_v16, 264  ;;  %v1118_v63 = vld [vmem:[#allocation15 + $0xf0] sm:$0xff]  ;;  %v1121_v3 = vld [vmem:[#allocation15 + $0x108] sm:$0xff]  ;;  %v1120_v9 = vld [vmem:[#allocation15 + $0x100] sm:$0xff] }
 0x15e   : > { %2797 = vmatpush1.bf16.msra.mxu1 %v2796_v28  ;;  %1312 = vmatprep.mubr.f32.mxu1 %v1084_v57  ;;  %v2816_v7 = vpack.c.bf16 %v1118_v63, %v1116_v62  ;;  %v2818_v8 = vpack.c.bf16 %v1123_v4, %v1121_v3  ;;  %v1122_v10 = vld [vmem:[#allocation15 + $0x110] sm:$0xff]  ;;  %v1125_v11 = vld [vmem:[#allocation15 + $0x128] sm:$0xff]  ;;  %v1127_v12 = vld [vmem:[#allocation15 + $0x138] sm:$0xff]  ;;  %v4161_v4 = vsub.s32 6, %v4109_v1 }
 0x15f   : > { %2799 = vmatprep.subr.bf16.mxu1 %v2798_v30  ;;  %v922_v14 = vld [vmem:[#allocation11 + $0x80] sm:$0xff]  ;;  %v923_v16 = vld [vmem:[#allocation11 + $0x88] sm:$0xff]  ;;  %v2820_v17 = vpack.c.bf16 %v1122_v10, %v1120_v9  ;;  %v2822_v24 = vpack.c.bf16 %v1127_v12, %v1125_v11  ;;  %v1126_v25 = vld [vmem:[#allocation15 + $0x130] sm:$0xff] }
 0x160   : > { %v1124_v19 = vld [vmem:[#allocation15 + $0x120] sm:$0xff]  ;;  %v2754_v21 = vpack.c.bf16 %v923_v16, %v922_v14  ;;  %v907_v23 = vld [vmem:[#allocation11 + $0x8] sm:$0xff]  ;;  %v925_v28 = vld [vmem:[#allocation11 + $0x98] sm:$0xff] }
 0x161   : > { %770 = vbcast.lane.b32.xlu0 %v768_v27, 256  ;;  %681 = vbcast.lane.b32.xlu1 %v679_v29, 256  ;;  %v906_v22 = vld [vmem:[#allocation11] sm:$0xff]  ;;  %v1131_v30 = vld [vmem:[#allocation15 + $0x158] sm:$0xff]  ;;  %v908_v32 = vld [vmem:[#allocation11 + $0x10] sm:$0xff] }
 0x162   : > { %2801 = vmatpush1.bf16.msra.mxu1 %v2800_v36  ;;  %v2756_v26 = vpack.c.bf16 %v907_v23, %v906_v22  ;;  %2755 = vmatprep.subr.bf16.mxu0 %v2754_v21  ;;  %v909_v34 = vld [vmem:[#allocation11 + $0x18] sm:$0xff]  ;;  %v2824_v36 = vpack.c.bf16 %v1126_v25, %v1124_v19  ;;  %v926_v39 = vld [vmem:[#allocation11 + $0xa0] sm:$0xff]  ;;  %v927_v40 = vld [vmem:[#allocation11 + $0xa8] sm:$0xff]  ;;  %v823_v21 = vrot.slane %v4114_v5, %v4161_v4 }
 0x163   : > { %2803 = vmatprep.subr.bf16.mxu1 %v2802_v37  ;;  %v1128_v37 = vld [vmem:[#allocation15 + $0x140] sm:$0xff]  ;;  %v2760_v38 = vpack.c.bf16 %v909_v34, %v908_v32  ;;  %v1133_v46 = vld [vmem:[#allocation15 + $0x168] sm:$0xff]  ;;  %v1135_v47 = vld [vmem:[#allocation15 + $0x178] sm:$0xff] }
 0x164   : > { %2757 = vmatpush3.bf16.msra.mxu0 %v2756_v26  ;;  %v928_v48 = vld [vmem:[#allocation11 + $0xb0] sm:$0xff]  ;;  %v913_v56 = vld [vmem:[#allocation11 + $0x38] sm:$0xff]  ;;  %v2830_v57 = vpack.c.bf16 %v1135_v47, %v1133_v46  ;;  %v930_v63 = vld [vmem:[#allocation11 + $0xc0] sm:$0xff] }
 0x165   : > { %774 = vbcast.lane.b32.xlu0 %v768_v27, 264  ;;  %685 = vbcast.lane.b32.xlu1 %v679_v29, 264  ;;  %v924_v27 = vld [vmem:[#allocation11 + $0x90] sm:$0xff]  ;;  %v1129_v29 = vld [vmem:[#allocation15 + $0x148] sm:$0xff]  ;;  %v1139_v62 = vld [vmem:[#allocation15 + $0x198] sm:$0xff] }
 0x166   : > { %2805 = vmatpush1.bf16.msra.mxu1 %v2804_v43  ;;  %v2758_v31 = vpack.c.bf16 %v925_v28, %v924_v27  ;;  %v2826_v41 = vpack.c.bf16 %v1131_v30, %v1129_v29  ;;  %v2762_v43 = vpack.c.bf16 %v927_v40, %v926_v39  ;;  %v912_v55 = vld [vmem:[#allocation11 + $0x30] sm:$0xff]  ;;  %v931_v3 = vld [vmem:[#allocation11 + $0xc8] sm:$0xff]  ;;  %v914_v9 = vld [vmem:[#allocation11 + $0x40] sm:$0xff] }
 0x167   : > { %2807 = vmatprep.subr.bf16.mxu1 %v2806_v45  ;;  %v911_v45 = vld [vmem:[#allocation11 + $0x28] sm:$0xff]  ;;  %v1136_v12 = vld [vmem:[#allocation15 + $0x180] sm:$0xff]  ;;  %v1138_v14 = vld [vmem:[#allocation15 + $0x190] sm:$0xff]  ;;  %v2770_v16 = vpack.c.bf16 %v931_v3, %v930_v63 }
 0x168   : > { %2759 = vmatprep.subr.bf16.mxu0 %v2758_v31  ;;  %v915_v10 = vld [vmem:[#allocation11 + $0x48] sm:$0xff]  ;;  %v933_v19 = vld [vmem:[#allocation11 + $0xd8] sm:$0xff]  ;;  %v2836_v23 = vpack.c.bf16 %v1138_v14, %v1136_v12  ;;  %v916_v25 = vld [vmem:[#allocation11 + $0x50] sm:$0xff] }
 0x169   : > { %781 = vbcast.lane.b32.xlu0 %v779_v42, 256  ;;  %692 = vbcast.lane.b32.xlu1 %v690_v44, 256  ;;  %v2772_v22 = vpack.c.bf16 %v915_v10, %v914_v9  ;;  %v917_v26 = vld [vmem:[#allocation11 + $0x58] sm:$0xff]  ;;  %v1140_v28 = vld [vmem:[#allocation15 + $0x1a0] sm:$0xff]  ;;  %v1142_v29 = vld [vmem:[#allocation15 + $0x1b0] sm:$0xff] }
 0x16a   : > { %2809 = vmatpush1.bf16.msra.mxu1 %v2808_v51  ;;  %2761 = vmatpush3.bf16.msra.mxu0 %v2760_v38  ;;  %v1145_v30 = vld [vmem:[#allocation15 + $0x1c8] sm:$0xff]  ;;  %v1147_v32 = vld [vmem:[#allocation15 + $0x1d8] sm:$0xff]  ;;  %v934_v34 = vld [vmem:[#allocation11 + $0xe0] sm:$0xff]  ;;  %v2776_v38 = vpack.c.bf16 %v917_v26, %v916_v25  ;;  %v2840_v39 = vpack.c.bf16 %v1142_v29, %v1140_v28 }
 0x16b   : > { %2811 = vmatprep.subr.bf16.mxu1 %v2810_v52  ;;  %v929_v52 = vld [vmem:[#allocation11 + $0xb8] sm:$0xff]  ;;  %2763 = vmatprep.subr.bf16.mxu0 %v2762_v43  ;;  %v918_v40 = vld [vmem:[#allocation11 + $0x60] sm:$0xff]  ;;  %v1154_v9 = vld [vmem:[#allocation15 + $0x210] sm:$0xff] }
 0x16c   : > { %v1144_v43 = vld [vmem:[#allocation15 + $0x1c0] sm:$0xff]  ;;  %v1151_v47 = vld [vmem:[#allocation15 + $0x1f8] sm:$0xff]  ;;  %v1162_v26 = vld [vmem:[#allocation15 + $0x250] sm:$0xff] }
 0x16d   : > { %785 = vbcast.lane.b32.xlu0 %v779_v42, 264  ;;  %696 = vbcast.lane.b32.xlu1 %v690_v44, 264  ;;  %v1130_v42 = vld [vmem:[#allocation15 + $0x150] sm:$0xff]  ;;  %v910_v44 = vld [vmem:[#allocation11 + $0x20] sm:$0xff]  ;;  %v1159_v12 = vld [vmem:[#allocation15 + $0x238] sm:$0xff] }
 0x16e   : > { %2813 = vmatpush1.bf16.msra.mxu1 %v2812_v59  ;;  %v2764_v51 = vpack.c.bf16 %v911_v45, %v910_v44  ;;  %v2828_v53 = vpack.c.bf16 %v1130_v42, %v1128_v37  ;;  %v1134_v59 = vld [vmem:[#allocation15 + $0x170] sm:$0xff]  ;;  %v4168_v37 = vsub.s32 7, %v4109_v1  ;;  %v2842_v42 = vpack.c.bf16 %v1147_v32, %v1145_v30  ;;  %v1149_v45 = vld [vmem:[#allocation15 + $0x1e8] sm:$0xff]  ;;  %v1487_v63 = vld [vmem:[#allocation16 + $0x80] sm:$0xff] }
 0x16f   : > { %2815 = vmatprep.subr.bf16.mxu1 %v2814_v61  ;;  %v2766_v61 = vpack.c.bf16 %v929_v52, %v928_v48  ;;  %v1146_v44 = vld [vmem:[#allocation15 + $0x1d0] sm:$0xff]  ;;  %v1083_v14 = vld [vmem:[%s4090_s14] sm:$0xff]  ;;  %v1167_v28 = vld [vmem:[#allocation15 + $0x278] sm:$0xff] }
 0x170   : > { %2765 = vmatpush3.bf16.msra.mxu0 %v2764_v51  ;;  %v936_v48 = vld [vmem:[#allocation11 + $0xf0] sm:$0xff]  ;;  %v834_v51 = vrot.slane %v4114_v5, %v4168_v37  ;;  %v1488_v5 = vld [vmem:[#allocation16 + $0x88] sm:$0xff]  ;;  %v1160_v25 = vld [vmem:[#allocation15 + $0x240] sm:$0xff] }
 0x171   : > { %792 = vbcast.lane.b32.xlu0 %v790_v58, 256  ;;  %703 = vbcast.lane.b32.xlu1 %v701_v60, 256  ;;  %v2946_v10 = vpack.c.bf16 %v1488_v5, %v1487_v63  ;;  %v2860_v29 = vpack.c.bf16 %v1162_v26, %v1160_v25  ;;  %v1166_v32 = vld [vmem:[#allocation15 + $0x270] sm:$0xff]  ;;  %v1196_v26 = vld [vmem:[#allocation15 + $0x360] sm:$0xff] }
 0x172   : > { %2817 = vmatpush1.bf16.msra.mxu1 %v2816_v7  ;;  %v2768_v7 = vpack.c.bf16 %v913_v56, %v912_v55  ;;  %2767 = vmatprep.subr.bf16.mxu0 %v2766_v61  ;;  %v920_v55 = vld [vmem:[#allocation11 + $0x70] sm:$0xff]  ;;  %v921_v56 = vld [vmem:[#allocation11 + $0x78] sm:$0xff] }
 0x173   : > { %2819 = vmatprep.subr.bf16.mxu1 %v2818_v8  ;;  %v2784_v3 = vpack.c.bf16 %v921_v56, %v920_v55  ;;  %v1181_v55 = vld [vmem:[#allocation15 + $0x2e8] sm:$0xff]  ;;  %v1183_v56 = vld [vmem:[#allocation15 + $0x2f8] sm:$0xff] }
 0x174   : > { %2769 = vmatpush3.bf16.msra.mxu0 %v2768_v7 }
 0x175   : > { %796 = vbcast.lane.b32.xlu0 %v790_v58, 264  ;;  %707 = vbcast.lane.b32.xlu1 %v701_v60, 264  ;;  %v1132_v58 = vld [vmem:[#allocation15 + $0x160] sm:$0xff]  ;;  %v1137_v60 = vld [vmem:[#allocation15 + $0x188] sm:$0xff] }
 0x176   : > { %2821 = vmatpush1.bf16.msra.mxu1 %v2820_v17  ;;  %v2832_v8 = vpack.c.bf16 %v1134_v59, %v1132_v58  ;;  %v2834_v11 = vpack.c.bf16 %v1139_v62, %v1137_v60  ;;  %v1143_v17 = vld [vmem:[#allocation15 + $0x1b8] sm:$0xff]  ;;  %2771 = vmatprep.subr.bf16.mxu0 %v2770_v16  ;;  %v1148_v58 = vld [vmem:[#allocation15 + $0x1e0] sm:$0xff]  ;;  %v1150_v59 = vld [vmem:[#allocation15 + $0x1f0] sm:$0xff] }
 0x177   : > { %2823 = vmatprep.subr.bf16.mxu1 %v2822_v24  ;;  %v734_v24 = vrot.slane %v4120_v13, %v4161_v4  ;;  %v1153_v60 = vld [vmem:[#allocation15 + $0x208] sm:$0xff]  ;;  %v1155_v62 = vld [vmem:[#allocation15 + $0x218] sm:$0xff]  ;;  %v2848_v7 = vpack.c.bf16 %v1150_v59, %v1148_v58  ;;  %v2878_v58 = vpack.c.bf16 %v1183_v56, %v1181_v55  ;;  %v1180_v59 = vld [vmem:[#allocation15 + $0x2e0] sm:$0xff] }
 0x178   : > { %2773 = vmatpush3.bf16.msra.mxu0 %v2772_v22  ;;  %v1163_v22 = vld [vmem:[#allocation15 + $0x258] sm:$0xff]  ;;  %v1208_v56 = vld [vmem:[#allocation15 + $0x3c0] sm:$0xff] }
 0x179   : > { %803 = vbcast.lane.b32.xlu0 %v801_v15, 256  ;;  %714 = vbcast.lane.b32.xlu1 %v712_v18, 256 }
 0x17a   : > { %2825 = vmatpush1.bf16.msra.mxu1 %v2824_v36  ;;  %v935_v36 = vld [vmem:[#allocation11 + $0xe8] sm:$0xff] }
 0x17b   : > { %2827 = vmatprep.subr.bf16.mxu1 %v2826_v41  ;;  %v919_v41 = vld [vmem:[#allocation11 + $0x68] sm:$0xff]  ;;  %v2778_v46 = vpack.c.bf16 %v935_v36, %v934_v34  ;;  %v1171_v36 = vld [vmem:[#allocation15 + $0x298] sm:$0xff] }
 0x17c   : > { %v2780_v52 = vpack.c.bf16 %v919_v41, %v918_v40  ;;  %v1169_v34 = vld [vmem:[#allocation15 + $0x288] sm:$0xff]  ;;  %v1168_v40 = vld [vmem:[#allocation15 + $0x280] sm:$0xff]  ;;  %v1170_v41 = vld [vmem:[#allocation15 + $0x290] sm:$0xff] }
 0x17d   : > { %807 = vbcast.lane.b32.xlu0 %v801_v15, 264  ;;  %718 = vbcast.lane.b32.xlu1 %v712_v18, 264  ;;  %v1141_v15 = vld [vmem:[#allocation15 + $0x1a8] sm:$0xff]  ;;  %v932_v18 = vld [vmem:[#allocation11 + $0xd0] sm:$0xff] }
 0x17e   : > { %2829 = vmatpush1.bf16.msra.mxu1 %v2828_v53  ;;  %v2838_v27 = vpack.c.bf16 %v1143_v17, %v1141_v15  ;;  %v2774_v31 = vpack.c.bf16 %v933_v19, %v932_v18  ;;  %v2844_v53 = vpack.c.bf16 %v1146_v44, %v1144_v43  ;;  %v1156_v17 = vld [vmem:[#allocation15 + $0x220] sm:$0xff]  ;;  %v1158_v18 = vld [vmem:[#allocation15 + $0x230] sm:$0xff]  ;;  %v1175_v43 = vld [vmem:[#allocation15 + $0x2b8] sm:$0xff]  ;;  %v2868_v44 = vpack.c.bf16 %v1170_v41, %v1168_v40 }
 0x17f   : > { %2831 = vmatprep.subr.bf16.mxu1 %v2830_v57  ;;  %v2846_v57 = vpack.c.bf16 %v1151_v47, %v1149_v45  ;;  %v1086_v19 = vld [vmem:[%s4090_s14 + $0x18] sm:$0xff]  ;;  %v1174_v47 = vld [vmem:[#allocation15 + $0x2b0] sm:$0xff] }
 0x180   : > { %2775 = vmatprep.subr.bf16.mxu0 %v2774_v31  ;;  %v1164_v31 = vld [vmem:[#allocation15 + $0x260] sm:$0xff]  ;;  %v1207_v40 = vld [vmem:[#allocation15 + $0x3b8] sm:$0xff] }
 0x181   : > { %814 = vbcast.lane.b32.xlu0 %v812_v49, 256  ;;  %725 = vbcast.lane.b32.xlu1 %v723_v54, 256 }
 0x182   : > { %2833 = vmatpush1.bf16.msra.mxu1 %v2832_v8  ;;  %2777 = vmatpush3.bf16.msra.mxu0 %v2776_v38  ;;  %v1152_v8 = vld [vmem:[#allocation15 + $0x200] sm:$0xff]  ;;  %v2864_v38 = vpack.c.bf16 %v1166_v32, %v1164_v31  ;;  %v1905_v31 = vand.u32 127, %v665_v0 }
 0x183   : > { %2835 = vmatprep.subr.bf16.mxu1 %v2834_v11  ;;  %2779 = vmatprep.subr.bf16.mxu0 %v2778_v46  ;;  %v1157_v11 = vld [vmem:[#allocation15 + $0x228] sm:$0xff]  ;;  %v2852_v15 = vpack.c.bf16 %v1154_v9, %v1152_v8  ;;  %v1172_v46 = vld [vmem:[#allocation15 + $0x2a0] sm:$0xff]  ;;  %v1191_v8 = vld [vmem:[#allocation15 + $0x338] sm:$0xff] }
 0x184   : > { %v2854_v16 = vpack.c.bf16 %v1159_v12, %v1157_v11  ;;  %v1188_v11 = vld [vmem:[#allocation15 + $0x320] sm:$0xff]  ;;  %v1190_v12 = vld [vmem:[#allocation15 + $0x330] sm:$0xff] }
 0x185   : > { %818 = vbcast.lane.b32.xlu0 %v812_v49, 264  ;;  %729 = vbcast.lane.b32.xlu1 %v723_v54, 264  ;;  %v937_v49 = vld [vmem:[#allocation11 + $0xf8] sm:$0xff]  ;;  %v745_v54 = vrot.slane %v4120_v13, %v4168_v37  ;;  %v2850_v13 = vpack.c.bf16 %v1155_v62, %v1153_v60  ;;  %v1182_v60 = vld [vmem:[#allocation15 + $0x2f0] sm:$0xff] }
 0x186   : > { %2837 = vmatpush1.bf16.msra.mxu1 %v2836_v23  ;;  %v2782_v61 = vpack.c.bf16 %v937_v49, %v936_v48  ;;  %2781 = vmatpush3.bf16.msra.mxu0 %v2780_v52  ;;  %v2856_v23 = vpack.c.bf16 %v1158_v18, %v1156_v17  ;;  %v1177_v48 = vld [vmem:[#allocation15 + $0x2c8] sm:$0xff]  ;;  %v1179_v49 = vld [vmem:[#allocation15 + $0x2d8] sm:$0xff]  ;;  %v2880_v63 = vpack.c.bf16 %v1182_v60, %v1180_v59  ;;  %v1192_v18 = vld [vmem:[#allocation15 + $0x340] sm:$0xff] }
 0x187   : > { %2839 = vmatprep.subr.bf16.mxu1 %v2838_v27  ;;  %v1165_v27 = vld [vmem:[#allocation15 + $0x268] sm:$0xff]  ;;  %v2874_v52 = vpack.c.bf16 %v1179_v49, %v1177_v48  ;;  %v1187_v62 = vld [vmem:[#allocation15 + $0x318] sm:$0xff]  ;;  %v874_v48 = vld [vmem:[%s4069_s7] sm:$0xff] }
 0x188   : > { %2783 = vmatprep.subr.bf16.mxu0 %v2782_v61  ;;  %v2862_v30 = vpack.c.bf16 %v1167_v28, %v1165_v27  ;;  %v1185_v61 = vld [vmem:[#allocation15 + $0x308] sm:$0xff]  ;;  %v1198_v27 = vld [vmem:[#allocation15 + $0x370] sm:$0xff]  ;;  %v1471_v60 = vld [vmem:[#allocation16] sm:$0xff] }
 0x189   : > { %825 = vbcast.lane.b32.xlu0 %v823_v21, 256  ;;  %736 = vbcast.lane.b32.xlu1 %v734_v24, 256  ;;  %v2882_v5 = vpack.c.bf16 %v1187_v62, %v1185_v61  ;;  %v1201_v28 = vld [vmem:[#allocation15 + $0x388] sm:$0xff]  ;;  %v2896_v32 = vpack.c.bf16 %v1198_v27, %v1196_v26  ;;  %v1491_v27 = vld [vmem:[#allocation16 + $0xa0] sm:$0xff] }
 0x18a   : > { %2841 = vmatpush1.bf16.msra.mxu1 %v2840_v39  ;;  %2785 = vmatpush3.bf16.msra.mxu0 %v2784_v3  ;;  %v2866_v39 = vpack.c.bf16 %v1171_v36, %v1169_v34  ;;  %v1184_v3 = vld [vmem:[#allocation15 + $0x300] sm:$0xff]  ;;  %v1472_v61 = vld [vmem:[#allocation16 + $0x8] sm:$0xff] }
 0x18b   : > { %2843 = vmatprep.subr.bf16.mxu1 %v2842_v42  ;;  %2947 = vmatprep.subr.bf16.mxu0 %v2946_v10  ;;  %v1173_v42 = vld [vmem:[#allocation15 + $0x2a8] sm:$0xff]  ;;  %v1200_v36 = vld [vmem:[#allocation15 + $0x380] sm:$0xff] }
 0x18c   : > { %v2870_v45 = vpack.c.bf16 %v1175_v43, %v1173_v42  ;;  %v1204_v43 = vld [vmem:[#allocation15 + $0x3a0] sm:$0xff]  ;;  %v1213_v62 = vld [vmem:[#allocation15 + $0x3e8] sm:$0xff] }
 0x18d   : > { %829 = vbcast.lane.b32.xlu0 %v823_v21, 264  ;;  %740 = vbcast.lane.b32.xlu1 %v734_v24, 264  ;;  %v1161_v21 = vld [vmem:[#allocation15 + $0x248] sm:$0xff] }
 0x18e   : > { %2845 = vmatpush1.bf16.msra.mxu1 %v2844_v53  ;;  %v2858_v24 = vpack.c.bf16 %v1163_v22, %v1161_v21  ;;  %v1176_v53 = vld [vmem:[#allocation15 + $0x2c0] sm:$0xff]  ;;  %v1197_v21 = vld [vmem:[#allocation15 + $0x368] sm:$0xff]  ;;  %v1199_v22 = vld [vmem:[#allocation15 + $0x378] sm:$0xff] }
 0x18f   : > { %2847 = vmatprep.subr.bf16.mxu1 %v2846_v57  ;;  %v2894_v25 = vpack.c.bf16 %v1199_v22, %v1197_v21  ;;  %v876_v22 = vld [vmem:[%s4069_s7 + $0x10] sm:$0xff] }
 0x191   : > { %836 = vbcast.lane.b32.xlu0 %v834_v51, 256  ;;  %747 = vbcast.lane.b32.xlu1 %v745_v54, 256 }
 0x192   : > { %2849 = vmatpush1.bf16.msra.mxu1 %v2848_v7  ;;  %v1186_v7 = vld [vmem:[#allocation15 + $0x310] sm:$0xff] }
 0x193   : > { %2851 = vmatprep.subr.bf16.mxu1 %v2850_v13  ;;  %v1189_v13 = vld [vmem:[#allocation15 + $0x328] sm:$0xff]  ;;  %v2884_v9 = vpack.c.bf16 %v1186_v7, %v1184_v3  ;;  %v1490_v3 = vld [vmem:[#allocation16 + $0x98] sm:$0xff] }
 0x194   : > { %v2886_v10 = vpack.c.bf16 %v1191_v8, %v1189_v13 }
 0x195   : > { %840 = vbcast.lane.b32.xlu0 %v834_v51, 264  ;;  %751 = vbcast.lane.b32.xlu1 %v745_v54, 264  ;;  %v2872_v51 = vpack.c.bf16 %v1174_v47, %v1172_v46  ;;  %v1178_v54 = vld [vmem:[#allocation15 + $0x2d0] sm:$0xff]  ;;  %v1209_v46 = vld [vmem:[#allocation15 + $0x3c8] sm:$0xff]  ;;  %v1211_v47 = vld [vmem:[#allocation15 + $0x3d8] sm:$0xff] }
 0x196   : > { %1313 = vmatmul.mubr.f32.vlgmr.msra.gmra.mrb[0].mxu1 %v1083_v14  ;;  %v2876_v57 = vpack.c.bf16 %v1178_v54, %v1176_v53  ;;  %v1193_v14 = vld [vmem:[#allocation15 + $0x348] sm:$0xff]  ;;  %v842_v54 = vld [vmem:[%s4062_s29] sm:$0xff]  ;;  %v2906_v55 = vpack.c.bf16 %v1211_v47, %v1209_v46  ;;  %v1475_v46 = vld [vmem:[#allocation16 + $0x20] sm:$0xff] }
 0x197   : > { %2853 = vmatpush1.bf16.msra.mxu1 %v2852_v15  ;;  %1383 = vmatprep.mubr.f32.mxu1 %v1086_v19  ;;  %v1195_v15 = vld [vmem:[#allocation15 + $0x358] sm:$0xff]  ;;  %v1194_v19 = vld [vmem:[#allocation15 + $0x350] sm:$0xff]  ;;  %v1476_v47 = vld [vmem:[#allocation16 + $0x28] sm:$0xff] }
 0x198   : > { %2855 = vmatprep.subr.bf16.mxu1 %v2854_v16  ;;  %v2888_v16 = vpack.c.bf16 %v1190_v12, %v1188_v11  ;;  %v2890_v17 = vpack.c.bf16 %v1195_v15, %v1193_v14  ;;  %v843_v11 = vld [vmem:[%s4062_s29 + $0x8] sm:$0xff]  ;;  %v1212_v12 = vld [vmem:[#allocation15 + $0x3e0] sm:$0xff]  ;;  %v1214_v14 = vld [vmem:[#allocation15 + $0x3f0] sm:$0xff] }
 0x199   : > { %v2912_v26 = vpack.c.bf16 %v1214_v14, %v1212_v12  ;;  %v1496_v12 = vld [vmem:[#allocation16 + $0xc8] sm:$0xff] }
 0x19b   : > { %2857 = vmatpush1.bf16.msra.mxu1 %v2856_v23  ;;  %v1902_v23 = vstv %s2531_s19 }
 0x19c   : > { %2859 = vmatprep.subr.bf16.mxu1 %v2858_v24  ;;  %v2892_v24 = vpack.c.bf16 %v1194_v19, %v1192_v18  ;;  %v1217_v18 = vld [vmem:[#allocation15 + $0x408] sm:$0xff]  ;;  %v1219_v19 = vld [vmem:[#allocation15 + $0x418] sm:$0xff] }
 0x19f   : > { %2861 = vmatpush1.bf16.msra.mxu1 %v2860_v29  ;;  %v1203_v29 = vld [vmem:[#allocation15 + $0x398] sm:$0xff] }
 0x1a0   : > { %2863 = vmatprep.subr.bf16.mxu1 %v2862_v30  ;;  %v1903_v30 = vadd.s32 %v1902_v23, %v4109_v1  ;;  %v2898_v34 = vpack.c.bf16 %v1203_v29, %v1201_v28  ;;  %v1473_v23 = vld [vmem:[#allocation16 + $0x10] sm:$0xff]  ;;  %v1492_v28 = vld [vmem:[#allocation16 + $0xa8] sm:$0xff] }
 0x1a2   : > { %vm1908_vm0 = vcmp.eq.s32.totalorder %v1903_v30, %v1905_v31  ;;  %v844_v31 = vld [vmem:[%s4062_s29 + $0x10] sm:$0xff] }
 0x1a3   : > { %2865 = vmatpush1.bf16.msra.mxu1 %v2864_v38  ;;  %v1202_v38 = vld [vmem:[#allocation15 + $0x390] sm:$0xff] }
 0x1a4   : > { %2867 = vmatprep.subr.bf16.mxu1 %v2866_v39  ;;  %v1205_v39 = vld [vmem:[#allocation15 + $0x3a8] sm:$0xff]  ;;  %v2900_v41 = vpack.c.bf16 %v1202_v38, %v1200_v36  ;;  %v1218_v36 = vld [vmem:[#allocation15 + $0x410] sm:$0xff] }
 0x1a5   : > { %v2902_v42 = vpack.c.bf16 %v1207_v40, %v1205_v39 }
 0x1a7   : > { %2869 = vmatpush1.bf16.msra.mxu1 %v2868_v44  ;;  %v1206_v44 = vld [vmem:[#allocation15 + $0x3b0] sm:$0xff] }
 0x1a8   : > { %2871 = vmatprep.subr.bf16.mxu1 %v2870_v45  ;;  %v3607_v45 = vmov 0.0   ;;  %v2904_v49 = vpack.c.bf16 %v1206_v44, %v1204_v43  ;;  %v877_v43 = vld [vmem:[%s4069_s7 + $0x18] sm:$0xff]  ;;  %v2954_v44 = vpack.c.bf16 %v1492_v28, %v1491_v27  ;;  %v1479_v27 = vld [vmem:[#allocation16 + $0x40] sm:$0xff] }
 0x1a9   : > { %v4180_v0 = vsel %vm1908_vm0, 1.0, %v3607_v45  ;;  %v1480_v28 = vld [vmem:[#allocation16 + $0x48] sm:$0xff] }
 0x1aa   : > { %v1975_v13 = vrot.slane %v4180_v0, %v4125_v20  ;;  %v1986_v29 = vrot.slane %v4180_v0, %v4132_v35 }
 0x1ab   : > { %2873 = vmatpush1.bf16.msra.mxu1 %v2872_v51  ;;  %v875_v51 = vld [vmem:[%s4069_s7 + $0x8] sm:$0xff] }
 0x1ac   : > { %2875 = vmatprep.subr.bf16.mxu1 %v2874_v52  ;;  %v1964_v52 = vrot.slane %v4180_v0, %v4112_v2 }
 0x1ae   : > { %1970 = vbcast.lane.b32.xlu1 %v1964_v52, 264  ;;  %1966 = vbcast.lane.b32.xlu0 %v1964_v52, 256  ;;  %v1493_v52 = vld [vmem:[#allocation16 + $0xb0] sm:$0xff] }
 0x1af   : > { %2877 = vmatpush1.bf16.msra.mxu1 %v2876_v57  ;;  %v1210_v57 = vld [vmem:[#allocation15 + $0x3d0] sm:$0xff] }
 0x1b0   : > { %2879 = vmatprep.subr.bf16.mxu1 %v2878_v58  ;;  %v2908_v7 = vpack.c.bf16 %v1210_v57, %v1208_v56  ;;  %v1220_v57 = vld [vmem:[#allocation15 + $0x420] sm:$0xff] }
 0x1b2   : > { %1981 = vbcast.lane.b32.xlu1 %v1975_v13, 264  ;;  %1977 = vbcast.lane.b32.xlu0 %v1975_v13, 256  ;;  %v1478_v13 = vld [vmem:[#allocation16 + $0x38] sm:$0xff] }
 0x1b3   : > { %2881 = vmatpush1.bf16.msra.mxu1 %v2880_v63  ;;  %v1215_v63 = vld [vmem:[#allocation15 + $0x3f8] sm:$0xff] }
 0x1b4   : > { %2883 = vmatprep.subr.bf16.mxu1 %v2882_v5  ;;  %v1489_v5 = vld [vmem:[#allocation16 + $0x90] sm:$0xff] }
 0x1b5   : > { %v2950_v21 = vpack.c.bf16 %v1490_v3, %v1489_v5  ;;  %v878_v5 = vld [vmem:[%s4069_s7 + $0x20] sm:$0xff] }
 0x1b6   : > { %1992 = vbcast.lane.b32.xlu1 %v1986_v29, 264  ;;  %1988 = vbcast.lane.b32.xlu0 %v1986_v29, 256  ;;  %v2008_v29 = vrot.slane %v4180_v0, %v4147_v6 }
 0x1b7   : > { %2885 = vmatpush1.bf16.msra.mxu1 %v2884_v9 }
 0x1b8   : > { %2887 = vmatprep.subr.bf16.mxu1 %v2886_v10  ;;  %v2948_v10 = vpack.c.bf16 %v1472_v61, %v1471_v60  ;;  %v1225_v61 = vld [vmem:[#allocation15 + $0x448] sm:$0xff] }
 0x1bb   : > { %2889 = vmatpush1.bf16.msra.mxu1 %v2888_v16 }
 0x1bc   : > { %2891 = vmatprep.subr.bf16.mxu1 %v2890_v17  ;;  %v2910_v17 = vpack.c.bf16 %v1215_v63, %v1213_v62  ;;  %v1227_v62 = vld [vmem:[#allocation15 + $0x458] sm:$0xff]  ;;  %v2956_v63 = vpack.c.bf16 %v1476_v47, %v1475_v46  ;;  %v2964_v46 = vpack.c.bf16 %v1480_v28, %v1479_v27  ;;  %v880_v47 = vld [vmem:[%s4069_s7 + $0x30] sm:$0xff]  ;;  %v882_v28 = vld [vmem:[%s4069_s7 + $0x40] sm:$0xff] }
 0x1bf   : > { %2893 = vmatpush1.bf16.msra.mxu1 %v2892_v24  ;;  %v1474_v24 = vld [vmem:[#allocation16 + $0x18] sm:$0xff] }
 0x1c0   : > { %2895 = vmatprep.subr.bf16.mxu1 %v2894_v25  ;;  %v2952_v40 = vpack.c.bf16 %v1474_v24, %v1473_v23  ;;  %v1231_v23 = vld [vmem:[#allocation15 + $0x478] sm:$0xff] }
 0x1c3   : > { %2897 = vmatpush1.bf16.msra.mxu1 %v2896_v32  ;;  %v2914_v32 = vpack.c.bf16 %v1219_v19, %v1217_v18  ;;  %v1226_v18 = vld [vmem:[#allocation15 + $0x450] sm:$0xff] }
 0x1c4   : > { %2899 = vmatprep.subr.bf16.mxu1 %v2898_v34  ;;  %v1216_v34 = vld [vmem:[#allocation15 + $0x400] sm:$0xff] }
 0x1c7   : > { %2901 = vmatpush1.bf16.msra.mxu1 %v2900_v41  ;;  %v1221_v41 = vld [vmem:[#allocation15 + $0x428] sm:$0xff] }
 0x1c8   : > { %2903 = vmatprep.subr.bf16.mxu1 %v2902_v42  ;;  %v1223_v42 = vld [vmem:[#allocation15 + $0x438] sm:$0xff] }
 0x1c9   : > { %v2918_v56 = vpack.c.bf16 %v1223_v42, %v1221_v41 }
 0x1cb   : > { %v760_v53 = vpop.permute.xlu0 %759  ;;  %v764_v59 = vpop.permute.xlu1 %763  ;;  %2905 = vmatpush1.bf16.msra.mxu1 %v2904_v49  ;;  %v1085_v49 = vld [vmem:[%s4090_s14 + $0x10] sm:$0xff] }
 0x1cc   : > { %v890_v58 = vmul.f32 %v874_v48, %v760_v53  ;;  %v891_v8 = vmul.f32 %v875_v51, %v764_v59  ;;  %2907 = vmatprep.subr.bf16.mxu1 %v2906_v55  ;;  %v2916_v51 = vpack.c.bf16 %v1218_v36, %v1216_v34  ;;  %v1494_v53 = vld [vmem:[#allocation16 + $0xb8] sm:$0xff]  ;;  %v845_v55 = vld [vmem:[%s4062_s29 + $0x18] sm:$0xff] }
 0x1cd   : > { %v2958_v3 = vpack.c.bf16 %v1494_v53, %v1493_v52  ;;  %v1498_v34 = vld [vmem:[#allocation16 + $0xd8] sm:$0xff]  ;;  %v2019_v52 = vrot.slane %v4180_v0, %v4154_v33 }
 0x1ce   : > { %1002 = vmatprep.mubr.f32.mxu0 %v890_v58  ;;  %v1222_v58 = vld [vmem:[#allocation15 + $0x430] sm:$0xff]  ;;  %v847_v36 = vld [vmem:[%s4062_s29 + $0x28] sm:$0xff] }
 0x1cf   : > { %v671_v9 = vpop.permute.xlu0 %670  ;;  %v675_v16 = vpop.permute.xlu1 %674  ;;  %2909 = vmatpush1.bf16.msra.mxu1 %v2908_v7  ;;  %v1477_v7 = vld [vmem:[#allocation16 + $0x30] sm:$0xff] }
 0x1d0   : > { %v858_v15 = vmul.f32 %v842_v54, %v671_v9  ;;  %v859_v25 = vmul.f32 %v843_v11, %v675_v16  ;;  %2911 = vmatprep.subr.bf16.mxu1 %v2910_v17  ;;  %v1495_v11 = vld [vmem:[#allocation16 + $0xc0] sm:$0xff]  ;;  %v2922_v16 = vpack.c.bf16 %v1227_v62, %v1225_v61  ;;  %v2960_v24 = vpack.c.bf16 %v1478_v13, %v1477_v7  ;;  %v1234_v61 = vld [vmem:[#allocation15 + $0x490] sm:$0xff]  ;;  %v881_v13 = vld [vmem:[%s4069_s7 + $0x38] sm:$0xff] }
 0x1d1   : > { %v1224_v17 = vld [vmem:[#allocation15 + $0x440] sm:$0xff] }
 0x1d2   : > { %1003 = vmatmul.mubr.f32.vlgmr.msra.gmra.mrb[0].mxu0 %v858_v15  ;;  %v846_v15 = vld [vmem:[%s4062_s29 + $0x20] sm:$0xff] }
 0x1d3   : > { %2949 = vmatpush3.bf16.msra.mxu0 %v2948_v10  ;;  %1007 = vmatprep.mubr.f32.mxu0 %v891_v8  ;;  %v771_v30 = vpop.permute.xlu0 %770  ;;  %v682_v39 = vpop.permute.xlu1 %681  ;;  %v1997_v8 = vrot.slane %v4180_v0, %v4139_v50  ;;  %v2920_v10 = vpack.c.bf16 %v1222_v58, %v1220_v57  ;;  %v848_v58 = vld [vmem:[%s4062_s29 + $0x30] sm:$0xff] }
 0x1d4   : > { %v892_v38 = vmul.f32 %v876_v22, %v771_v30  ;;  %2951 = vmatprep.subr.bf16.mxu0 %v2950_v21  ;;  %2913 = vmatpush1.bf16.msra.mxu1 %v2912_v26  ;;  %v860_v48 = vmul.f32 %v844_v31, %v682_v39  ;;  %v1229_v22 = vld [vmem:[#allocation15 + $0x468] sm:$0xff]  ;;  %v2962_v26 = vpack.c.bf16 %v1496_v12, %v1495_v11  ;;  %v1228_v39 = vld [vmem:[#allocation15 + $0x460] sm:$0xff] }
 0x1d5   : > { %2915 = vmatprep.subr.bf16.mxu1 %v2914_v32  ;;  %2003 = vbcast.lane.b32.xlu1 %v1997_v8, 264  ;;  %v2924_v31 = vpack.c.bf16 %v1226_v18, %v1224_v17  ;;  %v1497_v32 = vld [vmem:[#allocation16 + $0xd0] sm:$0xff]  ;;  %v2030_v11 = vrot.slane %v4180_v0, %v4161_v4  ;;  %v849_v18 = vld [vmem:[%s4062_s29 + $0x38] sm:$0xff] }
 0x1d6   : > { %1008 = vmatmul.mubr.f32.gmra.mrb[2].mxu0 %v859_v25  ;;  %v879_v25 = vld [vmem:[%s4069_s7 + $0x28] sm:$0xff]  ;;  %1999 = vbcast.lane.b32.xlu0 %v1997_v8, 256 }
 0x1d7   : > { %1012 = vmatprep.mubr.f32.mxu0 %v892_v38  ;;  %v775_v54 = vpop.permute.xlu0 %774  ;;  %2953 = vmatpush3.bf16.msra.mxu0 %v2952_v40  ;;  %v686_v60 = vpop.permute.xlu1 %685  ;;  %v2926_v38 = vpack.c.bf16 %v1231_v23, %v1229_v22  ;;  %v1230_v40 = vld [vmem:[#allocation15 + $0x470] sm:$0xff] }
 0x1d8   : > { %v893_v59 = vmul.f32 %v877_v43, %v775_v54  ;;  %1384 = vmatmul.mubr.f32.vlgmr.msra.gmra.mrb[0].mxu1 %v1085_v49  ;;  %2955 = vmatprep.subr.bf16.mxu0 %v2954_v44  ;;  %v861_v9 = vmul.f32 %v845_v55, %v686_v60  ;;  %v1233_v43 = vld [vmem:[#allocation15 + $0x488] sm:$0xff]  ;;  %v1235_v44 = vld [vmem:[#allocation15 + $0x498] sm:$0xff]  ;;  %v1481_v49 = vld [vmem:[#allocation16 + $0x50] sm:$0xff]  ;;  %v2928_v54 = vpack.c.bf16 %v1230_v40, %v1228_v39 }
 0x1d9   : > { %2917 = vmatpush1.bf16.msra.mxu1 %v2916_v51  ;;  %1454 = vmatprep.mubr.f32.mxu1 %v3607_v45  ;;  %v1482_v51 = vld [vmem:[#allocation16 + $0x58] sm:$0xff]  ;;  %v1499_v55 = vld [vmem:[#allocation16 + $0xe0] sm:$0xff]  ;;  %v1238_v22 = vld [vmem:[#allocation15 + $0x4b0] sm:$0xff] }
 0x1da   : > { %1013 = vmatmul.mubr.f32.gmra.mrb[4].mxu0 %v860_v48  ;;  %2919 = vmatprep.subr.bf16.mxu1 %v2918_v56  ;;  %v2966_v48 = vpack.c.bf16 %v1498_v34, %v1497_v32  ;;  %v1500_v56 = vld [vmem:[#allocation16 + $0xe8] sm:$0xff]  ;;  %v1232_v60 = vld [vmem:[#allocation15 + $0x480] sm:$0xff]  ;;  %v2968_v7 = vpack.c.bf16 %v1482_v51, %v1481_v49  ;;  %v2041_v32 = vrot.slane %v4180_v0, %v4168_v37  ;;  %v4219_v39 = vld [vmem:[%s570_s25] sm:$0xff] }
 0x1db   : > { %1017 = vmatprep.mubr.f32.mxu0 %v893_v59  ;;  %v782_v14 = vpop.permute.xlu0 %781  ;;  %v693_v21 = vpop.permute.xlu1 %692  ;;  %2957 = vmatpush3.bf16.msra.mxu0 %v2956_v63  ;;  %v2930_v59 = vpack.c.bf16 %v1235_v44, %v1233_v43  ;;  %v2970_v8 = vpack.c.bf16 %v1500_v56, %v1499_v55  ;;  %v1240_v43 = vld [vmem:[#allocation15 + $0x4c0] sm:$0xff]  ;;  %v1242_v44 = vld [vmem:[#allocation15 + $0x4d0] sm:$0xff]  ;;  %v1245_v0 = vld [vmem:[#allocation15 + $0x4e8] sm:$0xff] }
 0x1dc   : > { %v894_v19 = vmul.f32 %v878_v5, %v782_v14  ;;  %2959 = vmatprep.subr.bf16.mxu0 %v2958_v3  ;;  %v862_v30 = vmul.f32 %v846_v15, %v693_v21  ;;  %2014 = vbcast.lane.b32.xlu1 %v2008_v29, 264  ;;  %v1237_v5 = vld [vmem:[#allocation15 + $0x4a8] sm:$0xff]  ;;  %v1239_v3 = vld [vmem:[#allocation15 + $0x4b8] sm:$0xff]  ;;  %v2932_v14 = vpack.c.bf16 %v1234_v61, %v1232_v60  ;;  %v1501_v15 = vld [vmem:[#allocation16 + $0xf0] sm:$0xff] }
 0x1dd   : > { %2921 = vmatpush1.bf16.msra.mxu1 %v2920_v10  ;;  %2010 = vbcast.lane.b32.xlu0 %v2008_v29, 256  ;;  %v1484_v10 = vld [vmem:[#allocation16 + $0x68] sm:$0xff]  ;;  %v1236_v21 = vld [vmem:[#allocation15 + $0x4a0] sm:$0xff]  ;;  %v883_v51 = vld [vmem:[%s4069_s7 + $0x48] sm:$0xff]  ;;  %v2940_v55 = vpack.c.bf16 %v1242_v44, %v1240_v43 }
 0x1de   : > { %1018 = vmatmul.mubr.f32.gmra.mrb[6].mxu0 %v861_v9  ;;  %2923 = vmatprep.subr.bf16.mxu1 %v2922_v16  ;;  %v1483_v9 = vld [vmem:[#allocation16 + $0x60] sm:$0xff]  ;;  %v1502_v16 = vld [vmem:[#allocation16 + $0xf8] sm:$0xff]  ;;  %v1246_v60 = vld [vmem:[#allocation15 + $0x4f0] sm:$0xff] }
 0x1df   : > { %1022 = vmatprep.mubr.f32.mxu0 %v894_v19  ;;  %v786_v45 = vpop.permute.xlu0 %785  ;;  %v697_v42 = vpop.permute.xlu1 %696  ;;  %2961 = vmatpush3.bf16.msra.mxu0 %v2960_v24  ;;  %v2934_v19 = vpack.c.bf16 %v1239_v3, %v1237_v5  ;;  %v2972_v27 = vpack.c.bf16 %v1484_v10, %v1483_v9  ;;  %v2974_v29 = vpack.c.bf16 %v1502_v16, %v1501_v15  ;;  %v853_v16 = vld [vmem:[%s4062_s29 + $0x58] sm:$0xff] }
 0x1e0   : > { %v895_v41 = vmul.f32 %v879_v25, %v786_v45  ;;  %2963 = vmatprep.subr.bf16.mxu0 %v2962_v26  ;;  %v863_v53 = vmul.f32 %v847_v36, %v697_v42  ;;  %2025 = vbcast.lane.b32.xlu1 %v2019_v52, 264  ;;  %v1241_v25 = vld [vmem:[#allocation15 + $0x4c8] sm:$0xff]  ;;  %v1243_v26 = vld [vmem:[#allocation15 + $0x4d8] sm:$0xff]  ;;  %v2936_v45 = vpack.c.bf16 %v1238_v22, %v1236_v21  ;;  %v1519_v36 = vld [vmem:[#allocation16 + $0x180] sm:$0xff] }
 0x1e1   : > { %2925 = vmatpush1.bf16.msra.mxu1 %v2924_v31  ;;  %2021 = vbcast.lane.b32.xlu0 %v2019_v52, 256  ;;  %v1486_v31 = vld [vmem:[#allocation16 + $0x78] sm:$0xff]  ;;  %v2938_v42 = vpack.c.bf16 %v1243_v26, %v1241_v25  ;;  %v2136_v5 = vrot.slane %v4219_v39, %v4125_v20  ;;  %v854_v22 = vld [vmem:[%s4062_s29 + $0x60] sm:$0xff]  ;;  %v857_v43 = vld [vmem:[%s4062_s29 + $0x78] sm:$0xff] }
 0x1e2   : > { %1023 = vmatmul.mubr.f32.gmra.mrb[8].mxu0 %v862_v30  ;;  %2927 = vmatprep.subr.bf16.mxu1 %v2926_v38  ;;  %v1485_v30 = vld [vmem:[#allocation16 + $0x70] sm:$0xff]  ;;  %v1520_v38 = vld [vmem:[#allocation16 + $0x188] sm:$0xff]  ;;  %v887_v25 = vld [vmem:[%s4069_s7 + $0x68] sm:$0xff] }
 0x1e3   : > { %1027 = vmatprep.mubr.f32.mxu0 %v895_v41  ;;  %v793_v57 = vpop.permute.xlu0 %792  ;;  %v704_v63 = vpop.permute.xlu1 %703  ;;  %2965 = vmatpush3.bf16.msra.mxu0 %v2964_v46  ;;  %v850_v41 = vld [vmem:[%s4062_s29 + $0x40] sm:$0xff]  ;;  %v2976_v49 = vpack.c.bf16 %v1486_v31, %v1485_v30  ;;  %v2978_v52 = vpack.c.bf16 %v1520_v38, %v1519_v36  ;;  %v888_v31 = vld [vmem:[%s4069_s7 + $0x70] sm:$0xff] }
 0x1e4   : > { %v896_v62 = vmul.f32 %v880_v47, %v793_v57  ;;  %2967 = vmatprep.subr.bf16.mxu0 %v2966_v48  ;;  %v864_v12 = vmul.f32 %v848_v58, %v704_v63  ;;  %2036 = vbcast.lane.b32.xlu1 %v2030_v11, 264  ;;  %v1247_v48 = vld [vmem:[#allocation15 + $0x4f8] sm:$0xff]  ;;  %v884_v63 = vld [vmem:[%s4069_s7 + $0x50] sm:$0xff] }
 0x1e5   : > { %2929 = vmatpush1.bf16.msra.mxu1 %v2928_v54  ;;  %2032 = vbcast.lane.b32.xlu0 %v2030_v11, 256  ;;  %v851_v57 = vld [vmem:[%s4062_s29 + $0x48] sm:$0xff]  ;;  %v2942_v58 = vpack.c.bf16 %v1247_v48, %v1245_v0  ;;  %v885_v11 = vld [vmem:[%s4069_s7 + $0x58] sm:$0xff]  ;;  %v1503_v48 = vld [vmem:[#allocation16 + $0x100] sm:$0xff] }
 0x1e6   : > { %1028 = vmatmul.mubr.f32.gmra.mrb[10].mxu0 %v863_v53  ;;  %2931 = vmatprep.subr.bf16.mxu1 %v2930_v59  ;;  %v2125_v53 = vrot.slane %v4219_v39, %v4112_v2  ;;  %v1244_v59 = vld [vmem:[#allocation15 + $0x4e0] sm:$0xff]  ;;  %v1462_v0 = vld [vmem:[#allocation14 + $0x8] sm:$0xff] }
 0x1e7   : > { %1032 = vmatprep.mubr.f32.mxu0 %v896_v62  ;;  %v797_v17 = vpop.permute.xlu0 %796  ;;  %v708_v24 = vpop.permute.xlu1 %707  ;;  %2969 = vmatpush3.bf16.msra.mxu0 %v2968_v7  ;;  %v2944_v7 = vpack.c.bf16 %v1246_v60, %v1244_v59  ;;  %v1523_v59 = vld [vmem:[#allocation16 + $0x1a0] sm:$0xff]  ;;  %v1524_v60 = vld [vmem:[#allocation16 + $0x1a8] sm:$0xff] }
 0x1e8   : > { %v897_v23 = vmul.f32 %v881_v13, %v797_v17  ;;  %2971 = vmatprep.subr.bf16.mxu0 %v2970_v8  ;;  %v865_v34 = vmul.f32 %v849_v18, %v708_v24  ;;  %2047 = vbcast.lane.b32.xlu1 %v2041_v32, 264  ;;  %v852_v8 = vld [vmem:[%s4062_s29 + $0x50] sm:$0xff] }
 0x1e9   : > { %2933 = vmatpush1.bf16.msra.mxu1 %v2932_v14  ;;  %2043 = vbcast.lane.b32.xlu0 %v2041_v32, 256  ;;  %v1087_v14 = vld [vmem:[%s4090_s14 + $0x20] sm:$0xff] }
 0x1ea   : > { %1033 = vmatmul.mubr.f32.gmra.mrb[12].mxu0 %v864_v12  ;;  %2935 = vmatprep.subr.bf16.mxu1 %v2934_v19  ;;  %v2147_v12 = vrot.slane %v4219_v39, %v4132_v35  ;;  %v886_v19 = vld [vmem:[%s4069_s7 + $0x60] sm:$0xff] }
 0x1eb   : > { %1037 = vmatprep.mubr.f32.mxu0 %v897_v23  ;;  %v804_v40 = vpop.permute.xlu0 %803  ;;  %v715_v47 = vpop.permute.xlu1 %714  ;;  %2973 = vmatpush3.bf16.msra.mxu0 %v2972_v27 }
 0x1ec   : > { %v898_v46 = vmul.f32 %v882_v28, %v804_v40  ;;  %2975 = vmatprep.subr.bf16.mxu0 %v2974_v29  ;;  %v866_v54 = vmul.f32 %v850_v41, %v715_v47  ;;  %2131 = vbcast.lane.b32.xlu1 %v2125_v53, 264  ;;  %v855_v28 = vld [vmem:[%s4062_s29 + $0x68] sm:$0xff]  ;;  %v889_v40 = vld [vmem:[%s4069_s7 + $0x78] sm:$0xff] }
 0x1ed   : > { %2937 = vmatpush1.bf16.msra.mxu1 %v2936_v45  ;;  %2127 = vbcast.lane.b32.xlu0 %v2125_v53, 256  ;;  %v856_v45 = vld [vmem:[%s4062_s29 + $0x70] sm:$0xff]  ;;  %v1461_v53 = vld [vmem:[#allocation14] sm:$0xff]  ;;  %s3483_s29 = sshll.u32 %s3609_s24, 4  ;;  %s3484_s29 = int_to_ptr.vmem [resolvable:$false] %s3483_s29 }
 0x1ee   : > { %1038 = vmatmul.mubr.f32.gmra.mrb[14].mxu0 %v865_v34  ;;  %2939 = vmatprep.subr.bf16.mxu1 %v2938_v42  ;;  %s3485_s23 = scalar_lea.vmem %s3484_s29, 4096  ;;  %p3486_p5 = scmp.lt.s32.totalorder %s4410_s16, %s3484_s29 }
 0x1ef   : > { %1042 = vmatprep.mubr.f32.mxu0 %v898_v46  ;;  %v808_v56 = vpop.permute.xlu0 %807  ;;  %v719_v62 = vpop.permute.xlu1 %718  ;;  %2977 = vmatpush3.bf16.msra.mxu0 %v2976_v49  ;;  %v1504_v49 = vld [vmem:[#allocation16 + $0x108] sm:$0xff]  ;;  %p3487_p2 = scmp.lt.s32.totalorder %s3485_s23, %s3479_s10 }
 0x1f0   : > { %v899_v61 = vmul.f32 %v883_v51, %v808_v56  ;;  %2979 = vmatprep.subr.bf16.mxu0 %v2978_v52  ;;  %v867_v3 = vmul.f32 %v851_v57, %v719_v62  ;;  %2142 = vbcast.lane.b32.xlu1 %v2136_v5, 264  ;;  %v1521_v51 = vld [vmem:[#allocation16 + $0x190] sm:$0xff]  ;;  %v1522_v52 = vld [vmem:[#allocation16 + $0x198] sm:$0xff] }
 0x1f1   : > { %2941 = vmatpush1.bf16.msra.mxu1 %v2940_v55  ;;  %2138 = vbcast.lane.b32.xlu0 %v2136_v5, 256  ;;  %v2982_v55 = vpack.c.bf16 %v1522_v52, %v1521_v51  ;;  %v1505_v56 = vld [vmem:[#allocation16 + $0x110] sm:$0xff]  ;;  %v1506_v57 = vld [vmem:[#allocation16 + $0x118] sm:$0xff]  ;;  %v1507_v5 = vld [vmem:[#allocation16 + $0x120] sm:$0xff]  ;;  %p3488_p10 = por %p3487_p2, %p3486_p5 }
 0x1f2   : > { %1043 = vmatmul.mubr.f32.gmra.mrb[16].mxu0 %v866_v54  ;;  %2943 = vmatprep.subr.bf16.mxu1 %v2942_v58  ;;  %v2980_v54 = vpack.c.bf16 %v1504_v49, %v1503_v48  ;;  %v1467_v58 = vld [vmem:[#allocation14 + $0x30] sm:$0xff]  ;;  %v1466_v62 = vld [vmem:[#allocation14 + $0x28] sm:$0xff]  ;;  %v2180_v48 = vrot.slane %v4219_v39, %v4154_v33  ;;  %v1469_v49 = vld [vmem:[#allocation14 + $0x40] sm:$0xff]  ;;  %v2202_v33 = vrot.slane %v4219_v39, %v4168_v37 }
 0x1f3   : > { %1047 = vmatprep.mubr.f32.mxu0 %v899_v61  ;;  %v815_v13 = vpop.permute.xlu0 %814  ;;  %v726_v10 = vpop.permute.xlu1 %725  ;;  %v2984_v61 = vpack.c.bf16 %v1506_v57, %v1505_v56  ;;  %v1539_v52 = vld [vmem:[#allocation16 + $0x220] sm:$0xff]  ;;  %v1465_v56 = vld [vmem:[#allocation14 + $0x20] sm:$0xff]  ;;  %p3489_p7 = pnand %p3488_p10, %p3482_p9 }
 0x1f4   : > { %v900_v9 = vmul.f32 %v884_v63, %v815_v13  ;;  %v868_v20 = vmul.f32 %v852_v8, %v726_v10  ;;  %2153 = vbcast.lane.b32.xlu1 %v2147_v12, 264  ;;  %v2986_v63 = vpack.c.bf16 %v1524_v60, %v1523_v59  ;;  %v1525_v13 = vld [vmem:[#allocation16 + $0x1b0] sm:$0xff]  ;;  %v1526_v8 = vld [vmem:[#allocation16 + $0x1b8] sm:$0xff]  ;;  %v1543_v60 = vld [vmem:[#allocation16 + $0x240] sm:$0xff] }
 0x1f5   : > { %2945 = vmatpush1.bf16.msra.mxu1 %v2944_v7  ;;  %2149 = vbcast.lane.b32.xlu0 %v2147_v12, 256  ;;  %v1464_v7 = vld [vmem:[#allocation14 + $0x18] sm:$0xff]  ;;  %v2990_v10 = vpack.c.bf16 %v1526_v8, %v1525_v13  ;;  %v1510_v12 = vld [vmem:[#allocation16 + $0x138] sm:$0xff]  ;;  %v1541_v57 = vld [vmem:[#allocation16 + $0x230] sm:$0xff] }
 0x1f6   : > { %1048 = vmatmul.mubr.f32.gmra.mrb[18].mxu0 %v867_v3  ;;  %v1508_v3 = vld [vmem:[#allocation16 + $0x128] sm:$0xff]  ;;  %v1549_v37 = vld [vmem:[#allocation16 + $0x270] sm:$0xff] }
 0x1f7   : > { %1052 = vmatprep.mubr.f32.mxu0 %v900_v9  ;;  %v819_v15 = vpop.permute.xlu0 %818  ;;  %v730_v18 = vpop.permute.xlu1 %729  ;;  %v2988_v9 = vpack.c.bf16 %v1508_v3, %v1507_v5  ;;  %v1547_v3 = vld [vmem:[#allocation16 + $0x260] sm:$0xff] }
 0x1f8   : > { %v901_v17 = vmul.f32 %v885_v11, %v819_v15  ;;  %1455 = vmatmul.mubr.f32.vlgmr.msra.gmra.mrb[0].mxu1 %v1087_v14  ;;  %v869_v21 = vmul.f32 %v853_v16, %v730_v18  ;;  %v1509_v11 = vld [vmem:[#allocation16 + $0x130] sm:$0xff]  ;;  %v1528_v14 = vld [vmem:[#allocation16 + $0x1c8] sm:$0xff] }
 0x1f9   : > { %v2992_v15 = vpack.c.bf16 %v1510_v12, %v1509_v11  ;;  %v1512_v18 = vld [vmem:[#allocation16 + $0x148] sm:$0xff] }
 0x1fa   : > { %1053 = vmatmul.mubr.f32.gmra.mrb[20].mxu0 %v868_v20  ;;  %v1527_v20 = vld [vmem:[#allocation16 + $0x1c0] sm:$0xff] }
 0x1fb   : > { %1057 = vmatprep.mubr.f32.mxu0 %v901_v17  ;;  %v826_v35 = vpop.permute.xlu0 %825  ;;  %v737_v24 = vpop.permute.xlu1 %736  ;;  %v2994_v16 = vpack.c.bf16 %v1528_v14, %v1527_v20  ;;  %v1511_v17 = vld [vmem:[#allocation16 + $0x140] sm:$0xff] }
 0x1fc   : > { %v902_v23 = vmul.f32 %v886_v19, %v826_v35  ;;  %v870_v26 = vmul.f32 %v854_v22, %v737_v24  ;;  %v1529_v19 = vld [vmem:[#allocation16 + $0x1d0] sm:$0xff]  ;;  %v2996_v35 = vpack.c.bf16 %v1512_v18, %v1511_v17  ;;  %v1514_v24 = vld [vmem:[#allocation16 + $0x158] sm:$0xff] }
 0x1fe   : > { %1058 = vmatmul.mubr.f32.gmra.mrb[22].mxu0 %v869_v21  ;;  %v1530_v21 = vld [vmem:[#allocation16 + $0x1d8] sm:$0xff] }
 0x1ff   : > { %1062 = vmatprep.mubr.f32.mxu0 %v902_v23  ;;  %v830_v27 = vpop.permute.xlu0 %829  ;;  %v741_v30 = vpop.permute.xlu1 %740  ;;  %v2998_v22 = vpack.c.bf16 %v1530_v21, %v1529_v19  ;;  %v1513_v23 = vld [vmem:[#allocation16 + $0x150] sm:$0xff] }
 0x200   : > { %v903_v29 = vmul.f32 %v887_v25, %v830_v27  ;;  %v871_v32 = vmul.f32 %v855_v28, %v741_v30  ;;  %v1531_v25 = vld [vmem:[#allocation16 + $0x1e0] sm:$0xff]  ;;  %v3000_v27 = vpack.c.bf16 %v1514_v24, %v1513_v23  ;;  %v1516_v30 = vld [vmem:[#allocation16 + $0x168] sm:$0xff] }
 0x202   : > { %1063 = vmatmul.mubr.f32.gmra.mrb[24].mxu0 %v870_v26  ;;  %v1532_v26 = vld [vmem:[#allocation16 + $0x1e8] sm:$0xff] }
 0x203   : > { %1067 = vmatprep.mubr.f32.mxu0 %v903_v29  ;;  %v837_v34 = vpop.permute.xlu0 %836  ;;  %v748_v38 = vpop.permute.xlu1 %747  ;;  %v3002_v28 = vpack.c.bf16 %v1532_v26, %v1531_v25  ;;  %v1515_v29 = vld [vmem:[#allocation16 + $0x160] sm:$0xff] }
 0x204   : > { %v904_v36 = vmul.f32 %v888_v31, %v837_v34  ;;  %v872_v41 = vmul.f32 %v856_v45, %v748_v38  ;;  %v1533_v31 = vld [vmem:[#allocation16 + $0x1f0] sm:$0xff]  ;;  %v3004_v34 = vpack.c.bf16 %v1516_v30, %v1515_v29  ;;  %v2158_v45 = vrot.slane %v4219_v39, %v4139_v50  ;;  %v1463_v50 = vld [vmem:[#allocation14 + $0x10] sm:$0xff] }
 0x205   : > { %v1517_v38 = vld [vmem:[#allocation16 + $0x170] sm:$0xff] }
 0x206   : > { %1068 = vmatmul.mubr.f32.gmra.mrb[26].mxu0 %v871_v32  ;;  %v1534_v32 = vld [vmem:[#allocation16 + $0x1f8] sm:$0xff]  ;;  %2164 = vbcast.lane.b32.xlu1 %v2158_v45, 264 }
 0x207   : > { %1072 = vmatprep.mubr.f32.mxu0 %v904_v36  ;;  %v841_v42 = vpop.permute.xlu0 %840  ;;  %v752_v46 = vpop.permute.xlu1 %751  ;;  %v3006_v36 = vpack.c.bf16 %v1534_v32, %v1533_v31  ;;  %2160 = vbcast.lane.b32.xlu0 %v2158_v45, 256  ;;  %v3608_v32 = vmov 1966171168  }
 0x208   : > { %v905_v44 = vmul.f32 %v889_v40, %v841_v42  ;;  %v873_v47 = vmul.f32 %v857_v43, %v752_v46  ;;  %v1518_v40 = vld [vmem:[#allocation16 + $0x178] sm:$0xff]  ;;  %v1536_v42 = vld [vmem:[#allocation16 + $0x208] sm:$0xff] }
 0x209   : > { %v3008_v43 = vpack.c.bf16 %v1518_v40, %v1517_v38 }
 0x20a   : > { %1073 = vmatmul.mubr.f32.gmra.mrb[28].mxu0 %v872_v41  ;;  %v1535_v41 = vld [vmem:[#allocation16 + $0x200] sm:$0xff] }
 0x20b   : > { %1077 = vmatprep.mubr.f32.mxu0 %v905_v44  ;;  %v2169_v44 = vrot.slane %v4219_v39, %v4147_v6  ;;  %v3010_v46 = vpack.c.bf16 %v1536_v42, %v1535_v41  ;;  %v1468_v6 = vld [vmem:[#allocation14 + $0x38] sm:$0xff] }
 0x20d   : > { %2175 = vbcast.lane.b32.xlu1 %v2169_v44, 264  ;;  %2171 = vbcast.lane.b32.xlu0 %v2169_v44, 256 }
 0x20e   : > { %1078 = vmatmul.mubr.f32.gmra.mrb[30].mxu0 %v873_v47  ;;  %v1537_v47 = vld [vmem:[#allocation16 + $0x210] sm:$0xff] }
 0x20f   : > { %1615 = vmatprep.mubr.f32.mxu0 %v1462_v0  ;;  %v1538_v0 = vld [vmem:[#allocation16 + $0x218] sm:$0xff] }
 0x210   : > { %v3014_v51 = vpack.c.bf16 %v1538_v0, %v1537_v47 }
 0x211   : > { %2186 = vbcast.lane.b32.xlu1 %v2180_v48, 264  ;;  %2182 = vbcast.lane.b32.xlu0 %v2180_v48, 256 }
 0x212   : > { %1616 = vmatmul.mubr.f32.vlgmr.msra.gmra.mrb[32].mxu0 %v1461_v53  ;;  %v1540_v53 = vld [vmem:[#allocation16 + $0x228] sm:$0xff] }
 0x213   : > { %2981 = vmatpush3.bf16.msra.mxu0 %v2980_v54  ;;  %1620 = vmatprep.mubr.f32.mxu0 %v1467_v58  ;;  %v2191_v54 = vrot.slane %v4219_v39, %v4161_v4  ;;  %v1542_v58 = vld [vmem:[#allocation16 + $0x238] sm:$0xff] }
 0x214   : > { %2983 = vmatprep.subr.bf16.mxu0 %v2982_v55  ;;  %v3018_v55 = vpack.c.bf16 %v1540_v53, %v1539_v52  ;;  %v3022_v59 = vpack.c.bf16 %v1542_v58, %v1541_v57  ;;  %v1550_v39 = vld [vmem:[#allocation16 + $0x278] sm:$0xff] }
 0x215   : > { %2197 = vbcast.lane.b32.xlu1 %v2191_v54, 264  ;;  %2193 = vbcast.lane.b32.xlu0 %v2191_v54, 256  ;;  %v3038_v8 = vpack.c.bf16 %v1550_v39, %v1549_v37 }
 0x216   : > { %1621 = vmatmul.mubr.f32.gmra.mrb[34].mxu0 %v1466_v62  ;;  %v1545_v62 = vld [vmem:[#allocation16 + $0x250] sm:$0xff] }
 0x217   : > { %2985 = vmatpush3.bf16.msra.mxu0 %v2984_v61  ;;  %1690 = vmatprep.mubr.f32.mxu0 %v1464_v7  ;;  %v1544_v61 = vld [vmem:[#allocation16 + $0x248] sm:$0xff] }
 0x218   : > { %2987 = vmatprep.subr.bf16.mxu0 %v2986_v63  ;;  %v3026_v4 = vpack.c.bf16 %v1544_v61, %v1543_v60  ;;  %v1546_v63 = vld [vmem:[#allocation16 + $0x258] sm:$0xff]  ;;  %v1548_v7 = vld [vmem:[#allocation16 + $0x268] sm:$0xff] }
 0x219   : > { %2208 = vbcast.lane.b32.xlu1 %v2202_v33, 264  ;;  %2204 = vbcast.lane.b32.xlu0 %v2202_v33, 256  ;;  %v3030_v5 = vpack.c.bf16 %v1546_v63, %v1545_v62  ;;  %v3034_v13 = vpack.c.bf16 %v1548_v7, %v1547_v3 }
 0x21b   : > { %2989 = vmatpush3.bf16.msra.mxu0 %v2988_v9  ;;  %v1470_v9 = vld [vmem:[#allocation14 + $0x48] sm:$0xff] }
 0x21c   : > { %2991 = vmatprep.subr.bf16.mxu0 %v2990_v10 }
 0x21f   : > { %2993 = vmatpush3.bf16.msra.mxu0 %v2992_v15 }
 0x220   : > { %2995 = vmatprep.subr.bf16.mxu0 %v2994_v16 }
 0x223   : > { %2997 = vmatpush3.bf16.msra.mxu0 %v2996_v35 }
 0x224   : > { %2999 = vmatprep.subr.bf16.mxu0 %v2998_v22 }
 0x227   : > { %3001 = vmatpush3.bf16.msra.mxu0 %v3000_v27 }
 0x228   : > { %3003 = vmatprep.subr.bf16.mxu0 %v3002_v28 }
 0x22b   : > { %3005 = vmatpush3.bf16.msra.mxu0 %v3004_v34  ;;  %v1779_v34 = vunpack.c.l.s4 %v3608_v32 }
 0x22c   : > { %3007 = vmatprep.subr.bf16.mxu0 %v3006_v36 }
 0x22d   : > { %v1780_v40 = vunpack.c.0.s8 %v1779_v34 }
 0x22f   : > { %3009 = vmatpush3.bf16.msra.mxu0 %v3008_v43  ;;  %v4254_v44 = vsub.s32 %v1780_v40, %v4109_v1 }
 0x230   : > { %3011 = vmatprep.subr.bf16.mxu0 %v3010_v46 }
 0x232   : > { %1691 = vmatmul.mubr.f32.vlgmr.msra.gmra.mrb[36].mxu0 %v1463_v50 }
 0x233   : > { %3013 = vmatpush3.bf16.msra.mxu0 %v3010_v46  ;;  %1695 = vmatprep.mubr.f32.mxu0 %v1469_v49 }
 0x234   : > { %3015 = vmatprep.subr.bf16.mxu0 %v3014_v51 }
 0x236   : > { %1696 = vmatmul.mubr.f32.gmra.mrb[38].mxu0 %v1468_v6 }
 0x237   : > { %3017 = vmatpush3.bf16.msra.mxu0 %v3014_v51  ;;  %2751 = vmatprep.mubr.f32.mxu0 %v1465_v56 }
 0x238   : > { %3019 = vmatprep.subr.bf16.mxu0 %v3018_v55 }
 0x23b   : > { %3021 = vmatpush3.bf16.msra.mxu0 %v3018_v55 }
 0x23c   : > { %3023 = vmatprep.subr.bf16.mxu0 %v3022_v59 }
 0x23f   : > { %3025 = vmatpush3.bf16.msra.mxu0 %v3022_v59 }
 0x240   : > { %3027 = vmatprep.subr.bf16.mxu0 %v3026_v4 }
 0x243   : > { %3029 = vmatpush3.bf16.msra.mxu0 %v3026_v4 }
 0x244   : > { %3031 = vmatprep.subr.bf16.mxu0 %v3030_v5 }
 0x247   : > { %3033 = vmatpush3.bf16.msra.mxu0 %v3030_v5 }
 0x248   : > { %3035 = vmatprep.subr.bf16.mxu0 %v3034_v13 }
 0x24b   : > { %3037 = vmatpush3.bf16.msra.mxu0 %v3034_v13 }
 0x24c   : > { %3039 = vmatprep.subr.bf16.mxu0 %v3038_v8 }
 0x24f   : > { %3041 = vmatpush3.bf16.msra.mxu0 %v3038_v8 }
 0x252   : > { %2752 = vmatmul.mubr.f32.vlgmr.msra.gmra.mrb[40].mxu0 %v1470_v9 }
 0x2a5   : > { %v2577_v10 = vpop.f32.mrb[0].mxu0 }
 0x2a6   : > { %v2578_v11 = vpop.f32.mrb[1].mxu0 }
 0x2a7   : > { %v2579_v12 = vadd.f32 %v2578_v11, %v2577_v10 }
 0x2a9   : > { %v2580_v20 = vpop.f32.mrb[2].mxu0 }
 0x2aa   : > { %v2581_v14 = vpop.f32.mrb[3].mxu0 }
 0x2ab   : > { %v2582_v15 = vadd.f32 %v2581_v14, %v2580_v20 }
 0x2ad   : > { %v2583_v16 = vpop.f32.mrb[4].mxu0 }
 0x2ae   : > { %v2584_v17 = vpop.f32.mrb[5].mxu0 }
 0x2af   : > { %v2585_v18 = vadd.f32 %v2584_v17, %v2583_v16  ;;  %v4288_v16 = vpop.permute.xlu1 %1970 }
 0x2b1   : > { %v2586_v19 = vpop.f32.mrb[6].mxu0 }
 0x2b2   : > { %v2587_v21 = vpop.f32.mrb[7].mxu0 }
 0x2b3   : > { %v2588_v35 = vadd.f32 %v2587_v21, %v2586_v19  ;;  %v4291_v21 = vpop.permute.xlu0 %1966  ;;  %v4301_v32 = vpop.permute.xlu1 %1981 }
 0x2b5   : > { %v2589_v22 = vpop.f32.mrb[8].mxu0 }
 0x2b6   : > { %v2590_v23 = vpop.f32.mrb[9].mxu0 }
 0x2b7   : > { %v2591_v24 = vadd.f32 %v2590_v23, %v2589_v22 }
 0x2b9   : > { %v2592_v25 = vpop.f32.mrb[10].mxu0 }
 0x2ba   : > { %v2593_v26 = vpop.f32.mrb[11].mxu0 }
 0x2bb   : > { %v2594_v27 = vadd.f32 %v2593_v26, %v2592_v25 }
 0x2bd   : > { %v2595_v28 = vpop.f32.mrb[12].mxu0 }
 0x2be   : > { %v2596_v29 = vpop.f32.mrb[13].mxu0 }
 0x2bf   : > { %v2597_v30 = vadd.f32 %v2596_v29, %v2595_v28 }
 0x2c1   : > { %v2598_v31 = vpop.f32.mrb[14].mxu0 }
 0x2c2   : > { %v2599_v45 = vpop.f32.mrb[15].mxu0 }
 0x2c3   : > { %v2600_v36 = vadd.f32 %v2599_v45, %v2598_v31 }
 0x2c5   : > { %v2601_v38 = vpop.f32.mrb[16].mxu0 }
 0x2c6   : > { %v2602_v41 = vpop.f32.mrb[17].mxu0 }
 0x2c7   : > { %v2603_v42 = vadd.f32 %v2602_v41, %v2601_v38  ;;  %v4306_v38 = vpop.permute.xlu0 %1977 }
 0x2c9   : > { %v2604_v43 = vpop.f32.mrb[18].mxu0 }
 0x2ca   : > { %v2605_v46 = vpop.f32.mrb[19].mxu0 }
 0x2cb   : > { %v2606_v47 = vadd.f32 %v2605_v46, %v2604_v43  ;;  %v1456_v0 = vpop.f32.mrb[0].mxu1 }
 0x2cc   : > { %v1777_v50 = vcombine.high %v1456_v0, %v1456_v0  ;;  %v1784_v48 = vrot.slane %v1456_v0, %v4254_v44  ;;  %v4257_v49 = vpop.f32.mrb[1].mxu1  ;;  %v1993_v0 = vpop.permute.xlu1 %1992 }
 0x2cd   : > { %v2607_v51 = vpop.f32.mrb[20].mxu0 }
 0x2ce   : > { %v2608_v52 = vpop.f32.mrb[21].mxu0  ;;  %v1791_v53 = vrot.slane %v1777_v50, %v4254_v44  ;;  %v1792_v6 = vcombine.high %v1784_v48, %v1784_v48  ;;  %v1800_v54 = vrot.slane %v1784_v48, %v4254_v44  ;;  %v1989_v48 = vpop.permute.xlu0 %1988 }
 0x2cf   : > { %v2609_v55 = vadd.f32 %v2608_v52, %v2607_v51 }
 0x2d0   : > { %v1807_v56 = vrot.slane %v1791_v53, %v4254_v44  ;;  %v1814_v1 = vrot.slane %v1792_v6, %v4254_v44  ;;  %v1822_v57 = vcombine.high %v1800_v54, %v1800_v54  ;;  %v1829_v33 = vrot.slane %v1800_v54, %v4112_v2  ;;  %v2004_v54 = vpop.permute.xlu1 %2003 }
 0x2d1   : > { %v2610_v58 = vpop.f32.mrb[22].mxu0  ;;  %v1793_v8 = vcombine.high %v1791_v53, %v1791_v53 }
 0x2d2   : > { %v2611_v59 = vpop.f32.mrb[23].mxu0  ;;  %v1824_v60 = vcombine.high %v1814_v1, %v1814_v1  ;;  %v1833_v61 = vrot.slane %v1814_v1, %v4112_v2  ;;  %v1837_v4 = vrot.slane %v1822_v57, %v4112_v2  ;;  %v1845_v62 = vrot.slane %v1807_v56, %v4112_v2 }
 0x2d3   : > { %v4267_v63 = vadd.f32 %v2579_v12, %v1829_v33  ;;  %v4269_v5 = vadd.f32 %v2582_v15, %v1829_v33  ;;  %v1821_v17 = vrot.slane %v1793_v8, %v4254_v44  ;;  %v1823_v22 = vcombine.high %v1807_v56, %v1807_v56 }
 0x2d4   : > { %v1841_v3 = vrot.slane %v1824_v60, %v4112_v2  ;;  %v4272_v7 = vadd.f32 %v2585_v18, %v1833_v61  ;;  %v4274_v13 = vadd.f32 %v2588_v35, %v1833_v61  ;;  %v4276_v37 = vadd.f32 %v2591_v24, %v1837_v4  ;;  %v2015_v56 = vpop.permute.xlu1 %2014 }
 0x2d5   : > { %v2613_v39 = vpop.f32.mrb[24].mxu0  ;;  %v4278_v9 = vadd.f32 %v2594_v27, %v1837_v4  ;;  %v4280_v10 = vadd.f32 %v2603_v42, %v1845_v62  ;;  %v4282_v11 = vadd.f32 %v2606_v47, %v1845_v62  ;;  %v2612_v18 = vadd.f32 %v2611_v59, %v2610_v58 }
 0x2d6   : > { %v2614_v12 = vpop.f32.mrb[25].mxu0  ;;  %v4284_v20 = vadd.f32 %v2597_v30, %v1841_v3  ;;  %v4286_v14 = vadd.f32 %v2600_v36, %v1841_v3  ;;  %v1849_v24 = vrot.slane %v1821_v17, %v4112_v2  ;;  %v1853_v25 = vrot.slane %v1823_v22, %v4112_v2 }
 0x2d7   : > { %v2615_v35 = vadd.f32 %v2614_v12, %v2613_v39  ;;  %v1825_v27 = vcombine.high %v1821_v17, %v1821_v17 }
 0x2d8   : > { %v4295_v28 = vadd.f32 %v2609_v55, %v1849_v24  ;;  %v4297_v30 = vadd.f32 %v2612_v18, %v1849_v24  ;;  %v2000_v55 = vpop.permute.xlu0 %1999  ;;  %v2026_v57 = vpop.permute.xlu1 %2025  ;;  %v1912_v24 = vcombine.high %v4257_v49, %v4257_v49 }
 0x2d9   : > { %v2616_v15 = vpop.f32.mrb[26].mxu0  ;;  %v4299_v31 = vadd.f32 %v2615_v35, %v1853_v25  ;;  %v1857_v36 = vrot.slane %v1825_v27, %v4112_v2 }
 0x2da   : > { %v2617_v19 = vpop.f32.mrb[27].mxu0 }
 0x2db   : > { %v2618_v23 = vadd.f32 %v2617_v19, %v2616_v15 }
 0x2dc   : > { %v2011_v1 = vpop.permute.xlu0 %2010  ;;  %v2037_v33 = vpop.permute.xlu1 %2036 }
 0x2dd   : > { %v2619_v26 = vpop.f32.mrb[28].mxu0  ;;  %v4303_v34 = vadd.f32 %v2618_v23, %v1853_v25  ;;  %v1919_v23 = vrot.slane %v4257_v49, %v4254_v44 }
 0x2de   : > { %v2620_v29 = vpop.f32.mrb[29].mxu0 }
 0x2df   : > { %v2621_v45 = vadd.f32 %v2620_v29, %v2619_v26  ;;  %v1927_v25 = vcombine.high %v1919_v23, %v1919_v23  ;;  %v1926_v29 = vrot.slane %v1912_v24, %v4254_v44 }
 0x2e0   : > { %v2022_v58 = vpop.permute.xlu0 %2021  ;;  %v4312_v60 = vpop.permute.xlu1 %2047 }
 0x2e1   : > { %v2622_v40 = vpop.f32.mrb[30].mxu0  ;;  %v4308_v41 = vadd.f32 %v2621_v45, %v1857_v36  ;;  %4556 = vst [vmem:[#allocation40_spill] sm:$0xff] %v4312_v60  ;;  %v1935_v45 = vrot.slane %v1919_v23, %v4254_v44 }
 0x2e2   : > { %v2623_v42 = vpop.f32.mrb[31].mxu0 }
 0x2e3   : > { %4554 = vst [vmem:[#allocation38_spill] sm:$0xff] %v4308_v41  ;;  %v2624_v43 = vadd.f32 %v2623_v42, %v2622_v40  ;;  %v1928_v40 = vcombine.high %v1926_v29, %v1926_v29  ;;  %v1942_v42 = vrot.slane %v1926_v29, %v4254_v44 }
 0x2e4   : > { %v2033_v59 = vpop.permute.xlu0 %2032  ;;  %v4316_v39 = vpop.permute.xlu1 %2131 }
 0x2e5   : > { %v4310_v46 = vadd.f32 %v2624_v43, %v1857_v36  ;;  %v2657_v47 = vpop.f32.mrb[32].mxu0  ;;  %v1949_v36 = vrot.slane %v1927_v25, %v4254_v44  ;;  %v1956_v49 = vrot.slane %v1928_v40, %v4254_v44 }
 0x2e6   : > { %v2658_v50 = vpop.f32.mrb[33].mxu0 }
 0x2e7   : > { %4555 = vst [vmem:[#allocation39_spill] sm:$0xff] %v4310_v46  ;;  %v2659_v51 = vadd.f32 %v2658_v50, %v2657_v47  ;;  %v1957_v50 = vcombine.high %v1935_v45, %v1935_v45  ;;  %v1960_v24 = vcombine.high %v1956_v49, %v1956_v49 }
 0x2e8   : > { %v4314_v61 = vpop.permute.xlu0 %2043  ;;  %v4320_v35 = vpop.permute.xlu1 %2142 }
 0x2e9   : > { %v2660_v52 = vpop.f32.mrb[34].mxu0  ;;  %4557 = vst [vmem:[#allocation41_spill] sm:$0xff] %v4314_v61 }
 0x2ea   : > { %v2661_v53 = vpop.f32.mrb[35].mxu0 }
 0x2eb   : > { %v2662_v6 = vadd.f32 %v2661_v53, %v2660_v52  ;;  %v2052_v52 = vrot.slane %v1935_v45, %v4112_v2  ;;  %v1958_v53 = vcombine.high %v1942_v42, %v1942_v42 }
 0x2ec   : > { %v4318_v12 = vpop.permute.xlu0 %2127  ;;  %v2154_v26 = vpop.permute.xlu1 %2153 }
 0x2ed   : > { %v2089_v23 = vmul.f32 %v2052_v52, %v4291_v21  ;;  %v2076_v44 = vrot.slane %v1958_v53, %v4112_v2  ;;  %v2090_v25 = vmul.f32 %v2052_v52, %v4288_v16  ;;  %v2080_v16 = vrot.slane %v1960_v24, %v4112_v2 }
 0x2ef   : > { %v2102_v53 = vmul.f32 %v2076_v44, %v2037_v33 }
 0x2f0   : > { %v4322_v22 = vpop.permute.xlu0 %2138  ;;  %v2165_v43 = vpop.permute.xlu1 %2164 }
 0x2f4   : > { %v4328_v27 = vpop.permute.xlu0 %2149 }
 0x2f8   : > { %v4334_v47 = vpop.permute.xlu0 %2160 }
 0x2f9   : > { %4558 = vst [vmem:[#allocation42_spill] sm:$0xff] %v4334_v47 }
 0x305   : > { %v2695_v4 = vpop.f32.mrb[36].mxu0 }
 0x306   : > { %v2696_v62 = vpop.f32.mrb[37].mxu0 }
 0x307   : > { %v2697_v3 = vadd.f32 %v2696_v62, %v2695_v4  ;;  %v2060_v4 = vrot.slane %v1957_v50, %v4112_v2 }
 0x309   : > { %v2698_v8 = vpop.f32.mrb[38].mxu0  ;;  %v1693_v15 = vadd.f32 %v2697_v3, %v2659_v51  ;;  %v1959_v51 = vcombine.high %v1949_v36, %v1949_v36  ;;  %v2068_v3 = vrot.slane %v1942_v42, %v4112_v2  ;;  %v2094_v40 = vmul.f32 %v2060_v4, %v1993_v0 }
 0x30a   : > { %v2699_v17 = vpop.f32.mrb[39].mxu0 }
 0x30b   : > { %v2700_v18 = vadd.f32 %v2699_v17, %v2698_v8  ;;  %v2064_v62 = vrot.slane %v1959_v51, %v4112_v2  ;;  %v2176_v8 = vpop.permute.xlu1 %2175  ;;  %v4342_v17 = vpop.permute.xlu0 %2171  ;;  %v2098_v51 = vmul.f32 %v2068_v3, %v2015_v56  ;;  %v2097_v46 = vmul.f32 %v2068_v3, %v2011_v1 }
 0x30c   : > { %4559 = vst [vmem:[#allocation43_spill] sm:$0xff] %v4342_v17 }
 0x30d   : > { %v1698_v19 = vadd.f32 %v2700_v18, %v2662_v6  ;;  %v2056_v6 = vrot.slane %v1949_v36, %v4112_v2  ;;  %v2072_v18 = vrot.slane %v1956_v49, %v4112_v2  ;;  %v2093_v36 = vmul.f32 %v2060_v4, %v1989_v48 }
 0x30e   : > { %v2095_v50 = vmul.f32 %v2064_v62, %v2000_v55  ;;  %v2096_v42 = vmul.f32 %v2064_v62, %v2004_v54  ;;  %v2101_v49 = vmul.f32 %v2076_v44, %v2033_v59 }
 0x30f   : > { %v2091_v29 = vmul.f32 %v2056_v6, %v4306_v38  ;;  %v2092_v45 = vmul.f32 %v2056_v6, %v4301_v32  ;;  %v2100_v61 = vmul.f32 %v2072_v18, %v2026_v57  ;;  %v2099_v60 = vmul.f32 %v2072_v18, %v2022_v58  ;;  %v2187_v52 = vpop.permute.xlu1 %2186  ;;  %v2183_v38 = vpop.permute.xlu0 %2182  ;;  %v4560_v18 = vld [vmem:[#allocation42_spill] sm:$0xff] }
 0x313   : > { %v2198_v4 = vpop.permute.xlu1 %2197  ;;  %v2194_v62 = vpop.permute.xlu0 %2193 }
 0x325   : > { %v2753_v41 = vpop.f32.mrb[40].mxu0 }
 0x326   : > { %v4350_v17 = vadd.f32 %v2753_v41, %v1698_v19  ;;  %v1767_v21 = vpop.f32.mrb[41].mxu0 }
 0x327   : > { %v1768_v47 = vadd.f32 %v1767_v21, %v1693_v15 }
 0x328   : > { %v1883_v32 = vadd.f32 %v4269_v5, %v4350_v17  ;;  %v1885_v0 = vadd.f32 %v4274_v13, %v4350_v17  ;;  %v1887_v48 = vadd.f32 %v4278_v9, %v4350_v17  ;;  %v1889_v41 = vadd.f32 %v4286_v14, %v4350_v17 }
 0x329   : > { %v1891_v54 = vadd.f32 %v4282_v11, %v4350_v17  ;;  %v1893_v2 = vadd.f32 %v4297_v30, %v4350_v17  ;;  %v1882_v55 = vadd.f32 %v4267_v63, %v1768_v47  ;;  %v1884_v56 = vadd.f32 %v4272_v7, %v1768_v47 }
 0x32a   : > { %v2106_v5 = vadd.f32 %v2090_v25, %v1883_v32  ;;  %v2108_v1 = vadd.f32 %v2092_v45, %v1885_v0  ;;  %v2110_v57 = vadd.f32 %v2094_v40, %v1887_v48  ;;  %v2112_v13 = vadd.f32 %v2096_v42, %v1889_v41  ;;  %v2209_v42 = vpop.permute.xlu1 %2208 }
 0x32b   : > { %v2114_v58 = vadd.f32 %v2098_v51, %v1891_v54  ;;  %v2116_v9 = vadd.f32 %v2100_v61, %v1893_v2  ;;  %v1886_v33 = vadd.f32 %v4276_v37, %v1768_v47  ;;  %v1888_v14 = vadd.f32 %v4284_v20, %v1768_v47  ;;  %v2205_v51 = vpop.permute.xlu0 %2204 }
 0x32c   : > { %v2211_v11 = vmul.f32 %v4316_v39, %v2106_v5  ;;  %v2213_v59 = vmul.f32 %v4320_v35, %v2108_v1  ;;  %v2215_v30 = vmul.f32 %v2154_v26, %v2110_v57  ;;  %v2217_v15 = vmul.f32 %v2165_v43, %v2112_v13 }
 0x32d   : > { %v2219_v63 = vmul.f32 %v2176_v8, %v2114_v58  ;;  %v2221_v19 = vmul.f32 %v2187_v52, %v2116_v9  ;;  %v1890_v7 = vadd.f32 %v4280_v10, %v1768_v47  ;;  %v1892_v6 = vadd.f32 %v4295_v28, %v1768_v47 }
 0x32e   : > { %2227 = vst [vmem:[%s4374_s28 + $0x8] sm:$0xff] %v2211_v11  ;;  %2229 = vst [vmem:[%s4374_s28 + $0x18] sm:$0xff] %v2213_v59  ;;  %v2105_v37 = vadd.f32 %v2089_v23, %v1882_v55  ;;  %v2107_v20 = vadd.f32 %v2091_v29, %v1884_v56  ;;  %v2109_v61 = vadd.f32 %v2093_v36, %v1886_v33 }
 0x32f   : > { %2231 = vst [vmem:[%s4374_s28 + $0x28] sm:$0xff] %v2215_v30  ;;  %2233 = vst [vmem:[%s4374_s28 + $0x38] sm:$0xff] %v2217_v15  ;;  %v2111_v10 = vadd.f32 %v2095_v50, %v1888_v14  ;;  %v2113_v28 = vadd.f32 %v2097_v46, %v1890_v7  ;;  %v2115_v39 = vadd.f32 %v2099_v60, %v1892_v6  ;;  %v4561_v46 = vld [vmem:[#allocation43_spill] sm:$0xff] }
 0x330   : > { %2235 = vst [vmem:[%s4374_s28 + $0x48] sm:$0xff] %v2219_v63  ;;  %2237 = vst [vmem:[%s4374_s28 + $0x58] sm:$0xff] %v2221_v19  ;;  %v1895_v35 = vadd.f32 %v4303_v34, %v4350_v17  ;;  %v1894_v26 = vadd.f32 %v4299_v31, %v1768_v47  ;;  %v2210_v43 = vmul.f32 %v4318_v12, %v2105_v37  ;;  %v4562_v34 = vld [vmem:[#allocation40_spill] sm:$0xff]  ;;  %v4563_v31 = vld [vmem:[#allocation41_spill] sm:$0xff] }
 0x331   : > { %v2212_v3 = vmul.f32 %v4322_v22, %v2107_v20  ;;  %v2214_v8 = vmul.f32 %v4328_v27, %v2109_v61  ;;  %v2216_v23 = vmul.f32 %v4560_v18, %v2111_v10  ;;  %v2218_v60 = vmul.f32 %v4561_v46, %v2113_v28  ;;  %v4564_v12 = vld [vmem:[#allocation39_spill] sm:$0xff]  ;;  %v4565_v27 = vld [vmem:[#allocation38_spill] sm:$0xff] }
 0x332   : > { %v2220_v44 = vmul.f32 %v2183_v38, %v2115_v39  ;;  %v2118_v24 = vadd.f32 %v2102_v53, %v1895_v35  ;;  %v2117_v25 = vadd.f32 %v2101_v49, %v1894_v26  ;;  %v2104_v29 = vmul.f32 %v2080_v16, %v4562_v34  ;;  %2226 = vst [vmem:[%s4374_s28] sm:$0xff] %v2210_v43 }
 0x333   : > { %v2103_v45 = vmul.f32 %v2080_v16, %v4563_v31  ;;  %2228 = vst [vmem:[%s4374_s28 + $0x10] sm:$0xff] %v2212_v3  ;;  %2230 = vst [vmem:[%s4374_s28 + $0x20] sm:$0xff] %v2214_v8  ;;  %v1897_v22 = vadd.f32 %v4564_v12, %v4350_v17  ;;  %v1896_v36 = vadd.f32 %v4565_v27, %v1768_v47 }
 0x334   : > { %2232 = vst [vmem:[%s4374_s28 + $0x30] sm:$0xff] %v2216_v23  ;;  %2234 = vst [vmem:[%s4374_s28 + $0x40] sm:$0xff] %v2218_v60  ;;  %v2223_v40 = vmul.f32 %v2198_v4, %v2118_v24  ;;  %v2222_v50 = vmul.f32 %v2194_v62, %v2117_v25 }
 0x335   : > { %2236 = vst [vmem:[%s4374_s28 + $0x50] sm:$0xff] %v2220_v44  ;;  %v2120_v21 = vadd.f32 %v2104_v29, %v1897_v22  ;;  %v2119_v53 = vadd.f32 %v2103_v45, %v1896_v36 }
 0x336   : > { %2239 = vst [vmem:[%s4374_s28 + $0x68] sm:$0xff] %v2223_v40  ;;  %2238 = vst [vmem:[%s4374_s28 + $0x60] sm:$0xff] %v2222_v50 }
 0x337   : > { %v2225_v47 = vmul.f32 %v2209_v42, %v2120_v21  ;;  %v2224_v17 = vmul.f32 %v2205_v51, %v2119_v53 }
 0x339   : > { %2241 = vst [vmem:[%s4374_s28 + $0x78] sm:$0xff] %v2225_v47  ;;  %2240 = vst [vmem:[%s4374_s28 + $0x70] sm:$0xff] %v2224_v17 }
 0x33a   : > { %3492 = shalt.err (!%p3489_p7)
}
 0x33b   : > { %s3493_s7 = scalar_lea.hbm %s4408_s0, 2048  ;;  %s3497_s22 = scalar_lea.hbm %s4567_s30, 4096 }
 0x33c   : > { %p3494_p12 = scmp.ne.s32.totalorder %s4408_s0, %s3493_s7  ;;  %p3498_p8 = scmp.lt.u32.totalorder %s4408_s0, %s4567_s30 }
 0x33d   : > { %p3499_p13 = scmp.lt.u32.totalorder %s3497_s22, %s3493_s7  ;;  %p3501_p4 = scmp.lt.u32.totalorder %s3493_s7, %s4408_s0 }
 0x33e   : > { %p3495_p1 = pnand %p3494_p12, %p4568_p11 }
 0x33f   : > { %p3500_p3 = por %p3499_p13, %p3498_p8 }
 0x340   : > { %p3496_p6 = pneg %p3495_p1 }
 0x341   : > { %p3502_p0 = por %p3501_p4, %p3500_p3 }
 0x343   : > { %p3503_p9 = pnand %p3502_p0, %p3496_p6 }
 0x345   : > { %3506 = shalt.err (!%p3503_p9)
}
 0x346   : > { %s3610_s21 = smov 128   ;;  %s3611_s14 = smov 8  }
 0x347   : > { %3077 = dma.vmem_to_hbm [thread:$0]  (%p4568_p11), %s4410_s16, 2048, %s4408_s0, %s2243_s18, %s3610_s21, %s3610_s21, %s3611_s14  }
 0x348 PF: > { %s4569_s11 = sld [smem:[#allocation27_spill]]  ;;  %s4570_s19 = sld [smem:[#allocation34_spill]] }
 0x349   : > { %s4571_s28 = sld [smem:[#allocation31_spill]] }
 0x34e   : > { %s2274_s26 = sand.u32 1, %s4569_s11   ;;  %p4572_p5 = scmp.ne.s32.totalorder %s4570_s19, 0 }
 0x34f   : > { %p4573_p2 = scmp.ge.s32.totalorder %s4571_s28, 2  ;;  %s2275_s20 = scalar_lea.sflag [#allocation4], %s2274_s26 }
 0x351   : > { %p3112_p10 = pnand %p4573_p2, %p4572_p5 }
 0x353   : > { %3564 = dma.done.wait (!%p3112_p10), %s2275_s20, 2048  }
 0x354   : > { %3566 = vsyncadd (!%p3112_p10), %s2275_s20, 4294965248  ;;  %s33_s18 = sadd.s32 1, %s4571_s28   ;;  %s4574_s13 = sld [smem:[#allocation28_spill]] }
 0x355   : > { %p30_p7 = scmp.ge.s32.totalorder %s33_s18, 4   ;;  %s4575_s14 = sld [smem:[#allocation29_spill]] }
 0x356   : > { %s4576_s15 = sld [smem:[#allocation37_spill]]  ;;  %s4577_s5 = sld [smem:[#allocation36_spill]] }
 0x357   : > { %s4578_s16 = smov %s3585_s17  ;;  %32 = sbr.rel (!%p30_p7) target bundleno = 17 (0x11), region = 181 }
 0x35c   : > { %s4579_s17 = smov %s4577_s5 }
 0x35e   :  { %2280 = vsyncpa [#allocation3], 1 }
 0x35f   :  { %2282 = vsyncpa [#allocation3 + $0x1], 1 }
 0x360   :  { %2283 = vsyncpa [#allocation6], 1 }
 0x361   :  { %2285 = vsyncpa [#allocation6 + $0x1], 1 }
 0x362   :  { %2286 = vsyncpa [#allocation9], 1 }
 0x363   :  { %2288 = vsyncpa [#allocation9 + $0x1], 1 }
 0x364   :  { %2289 = vsyncpa [#allocation12], 1 }
 0x365   :  { %2290 = vsyncpa [#allocation4], 1 }
 0x366   :  { %2292 = vsyncpa [#allocation4 + $0x1], 1 }

</bundles_post_ra>
